<compile_context>
chip_gen: v5e
topology: v5e:2x2
jax: 0.10.0
libtpu: 0.0.40
codegen_flags: <defaults>
</compile_context>

<pallas_src>
import functools

import jax
import jax.numpy as jnp
from jax.experimental import pallas as pl
from jax.experimental.pallas import tpu as pltpu

# ---- model config (small, synthetic) -------------------------------------
D_MODEL = 32
N_HEAD = 4
D_K = 8
D_V = 8
D_FF = 64
HDK = N_HEAD * D_K           # 32
HDV = N_HEAD * D_V           # 32
EPS = 1e-5                   # nn.LayerNorm default
NEG_INF = -1e9               # matches masked_fill-style masking of the reference
SCALE = 1.0 / (D_K ** 0.5)


# ---------------- in-kernel helpers (operate on loaded values) --------------
def _mmb(x, w, b):
    """y = x @ w + b, f32 operands, f32 MXU accumulation."""
    return jnp.dot(x, w, preferred_element_type=jnp.float32) + b


def _add_layernorm(y, res, g, b):
    """LayerNorm(y + res) over the last (model) axis, f32 math."""
    z = y + res
    mu = jnp.mean(z, axis=-1, keepdims=True)
    zc = z - mu
    var = jnp.mean(zc * zc, axis=-1, keepdims=True)
    return zc * jax.lax.rsqrt(var + EPS) * g + b


def _mh_attention_proj(q, k, v, mask_ref, wo, n_batch, sq, sk):
    """Per-batch, per-head SDPA fused with the output projection.

    q: (n_batch*sq, H*Dk)  k: (n_batch*sk, H*Dk)  v: (n_batch*sk, H*Dv)
    mask_ref: Ref of shape (n_batch, sq, sk); >0 means masked out.
    wo: (H*Dv, D) output-projection weight (bias added by caller).
    Returns (n_batch*sq, D): sum_h softmax(q_h k_h^T) v_h @ Wo[h-block].
    NOTE: the softmax scale is already folded into the Q projection weights.
    """
    per_batch = []
    for b in range(n_batch):                       # static unroll (n_batch <= 2)
        qb = q[b * sq:(b + 1) * sq, :]             # sublane-aligned static slices
        kb = k[b * sk:(b + 1) * sk, :]
        vb = v[b * sk:(b + 1) * sk, :]
        masked = mask_ref[b] > 0.0                 # (sq, sk)
        acc = jnp.zeros((sq, D_MODEL), jnp.float32)
        for h in range(N_HEAD):                    # static unroll over heads
            qh = qb[:, h * D_K:(h + 1) * D_K]
            kh = kb[:, h * D_K:(h + 1) * D_K]
            vh = vb[:, h * D_V:(h + 1) * D_V]
            # q @ k^T without an explicit transpose (contract last dims).
            s = jax.lax.dot_general(qh, kh, (((1,), (1,)), ((), ())),
                                    preferred_element_type=jnp.float32)
            s = jnp.where(masked, NEG_INF, s)
            s = s - jnp.max(s, axis=-1, keepdims=True)
            e = jnp.exp(s)
            p = e * pl.reciprocal(jnp.sum(e, axis=-1, keepdims=True), approx=True)
            ph = jnp.dot(p, vh, preferred_element_type=jnp.float32)   # (sq, Dv)
            # Fused partial out-projection: keeps the accumulator 32-lane dense
            # and avoids concatenating 8-lane head slices.
            acc = acc + jnp.dot(ph, wo[h * D_V:(h + 1) * D_V, :],
                                preferred_element_type=jnp.float32)
        per_batch.append(acc)
    if n_batch == 1:
        return per_batch[0]
    return jnp.concatenate(per_batch, axis=0)      # 8-row sublane-aligned concat


# ---------------- fused decoder-layer kernel (one grid step = Bp batches) ----
def _decoder_layer_kernel(
        n_batch, sd, se,
        dec_ref, enc_ref, npad_ref, smask_ref, cmask_ref,
        sa_wqkv_ref, sa_bqkv_ref, sa_wo_ref, sa_bo_ref, sa_g_ref, sa_b_ref,
        ca_wq_ref, ca_bq_ref, ca_wkv_ref, ca_bkv_ref, ca_wo_ref, ca_bo_ref,
        ca_g_ref, ca_b_ref,
        ff_w1_ref, ff_b1_ref, ff_w2_ref, ff_b2_ref, ff_g_ref, ff_b_ref,
        out_ref):
    x = dec_ref[...]          # (Bp*Sd, D) f32  -- batch folded into rows
    enc = enc_ref[...]        # (Bp*Se, D) f32
    npad = npad_ref[...]      # (Bp*Sd, 1) f32

    # ---- sublayer 1: masked multi-head self-attention ----------------------
    qkv = _mmb(x, sa_wqkv_ref[...], sa_bqkv_ref[...])        # (Bp*Sd, 3*H*Dk)
    a = _mh_attention_proj(qkv[:, :HDK], qkv[:, HDK:2 * HDK], qkv[:, 2 * HDK:],
                           smask_ref, sa_wo_ref[...], n_batch, sd, sd)
    x = _add_layernorm(a + sa_bo_ref[...], x, sa_g_ref[...], sa_b_ref[...]) * npad

    # ---- sublayer 2: encoder-decoder multi-head attention ------------------
    q = _mmb(x, ca_wq_ref[...], ca_bq_ref[...])               # (Bp*Sd, H*Dk)
    kv = _mmb(enc, ca_wkv_ref[...], ca_bkv_ref[...])          # (Bp*Se, 2*H*Dk)
    a = _mh_attention_proj(q, kv[:, :HDK], kv[:, HDK:],
                           cmask_ref, ca_wo_ref[...], n_batch, sd, se)
    x = _add_layernorm(a + ca_bo_ref[...], x, ca_g_ref[...], ca_b_ref[...]) * npad

    # ---- sublayer 3: position-wise FFN (Conv1d k=1 == per-token linear) ----
    h = jnp.maximum(_mmb(x, ff_w1_ref[...], ff_b1_ref[...]), 0.0)
    y = _mmb(h, ff_w2_ref[...], ff_b2_ref[...])
    x = _add_layernorm(y, x, ff_g_ref[...], ff_b_ref[...]) * npad

    out_ref[...] = x


# ---------------- wrapper ----------------------------------------------------
def _tensorcores_per_chip():
    """Best-effort TC count; safe fallback to 1 (v5e/v6e have 1, v7x has 2)."""
    try:
        kind = jax.devices()[0].device_kind.lower()
    except Exception:
        return 1
    return 2 if ("v7" in kind or "7x" in kind) else 1


def decoder_transformer_layer(params, dec_input, enc_output, non_pad_mask,
                              attn_self_mask, enc_dec_attn_mask):
    B, Sd, D = dec_input.shape
    Se = enc_output.shape[1]

    # Grid width: 1 step on single-TC chips (collapse the batch loop entirely),
    # 2 parallel steps (one per TensorCore) on v7x-class chips.
    ncores = _tensorcores_per_chip()
    G = 2 if (ncores == 2 and B % 2 == 0 and B >= 2) else 1
    Bp = B // G                       # batch elements per grid step

    # Fold batch into the row (sublane) dimension; cheap contiguous reshapes.
    dec2 = dec_input.reshape(B * Sd, D)
    enc2 = enc_output.reshape(B * Se, D)
    npad2 = non_pad_mask.astype(jnp.float32).reshape(B * Sd, 1)

    row_spec = lambda rows, cols: pl.BlockSpec((rows, cols), lambda g: (g, 0))
    mask_spec = lambda sq, sk: pl.BlockSpec((Bp, sq, sk), lambda g: (g, 0, 0))
    const_spec = lambda shape: pl.BlockSpec(shape, lambda g: (0, 0))

    p = params
    kernel = functools.partial(_decoder_layer_kernel, Bp, Sd, Se)

    in_specs = [
        row_spec(Bp * Sd, D),             # dec_input  (rows)
        row_spec(Bp * Se, D),             # enc_output (rows)
        row_spec(Bp * Sd, 1),             # non_pad_mask
        mask_spec(Sd, Sd),                # attn_self_mask
        mask_spec(Sd, Se),                # enc_dec_attn_mask
        const_spec((D, 3 * HDK)), const_spec((1, 3 * HDK)),      # sa qkv
        const_spec((HDV, D)), const_spec((1, D)),                # sa out proj
        const_spec((1, D)), const_spec((1, D)),                  # sa LN
        const_spec((D, HDK)), const_spec((1, HDK)),              # ca q
        const_spec((D, 2 * HDK)), const_spec((1, 2 * HDK)),      # ca kv
        const_spec((HDV, D)), const_spec((1, D)),                # ca out proj
        const_spec((1, D)), const_spec((1, D)),                  # ca LN
        const_spec((D, D_FF)), const_spec((1, D_FF)),            # ffn w1
        const_spec((D_FF, D)), const_spec((1, D)),               # ffn w2
        const_spec((1, D)), const_spec((1, D)),                  # ffn LN
    ]

    out2 = pl.pallas_call(
        kernel,
        out_shape=jax.ShapeDtypeStruct((B * Sd, D), jnp.float32),
        grid=(G,),
        in_specs=in_specs,
        out_specs=row_spec(Bp * Sd, D),
        compiler_params=pltpu.CompilerParams(
            dimension_semantics=("parallel",)),
    )(dec2, enc2, npad2, attn_self_mask, enc_dec_attn_mask,
      p["sa_wqkv"], p["sa_bqkv"], p["sa_wo"], p["sa_bo"], p["sa_g"], p["sa_b"],
      p["ca_wq"], p["ca_bq"], p["ca_wkv"], p["ca_bkv"], p["ca_wo"], p["ca_bo"],
      p["ca_g"], p["ca_b"],
      p["ff_w1"], p["ff_b1"], p["ff_w2"], p["ff_b2"], p["ff_g"], p["ff_b"])

    return out2.reshape(B, Sd, D)


# ---------------- deterministic parameter init -------------------------------
def _w(key, din, dout):
    return jax.random.normal(key, (din, dout), jnp.float32) * 0.02


def init_params(key):
    ks = jax.random.split(key, 10)
    zeros = lambda n: jnp.zeros((1, n), jnp.float32)
    ones = lambda n: jnp.ones((1, n), jnp.float32)
    # Softmax scale 1/sqrt(Dk) is folded into the Q projection weights
    # (one-time rescale; identical math to scaling q @ k^T).  Q biases are
    # zero here, otherwise they would be scaled too.
    sa_wq = _w(ks[0], D_MODEL, HDK) * SCALE
    # self-attention: Wq | Wk | Wv packed into one (D, 3*H*Dk) matmul
    sa_wqkv = jnp.concatenate(
        [sa_wq, _w(ks[1], D_MODEL, HDK), _w(ks[2], D_MODEL, HDV)], axis=1)
    # enc-dec attention: Wk | Wv packed into one (D, 2*H*Dk) matmul
    ca_wkv = jnp.concatenate(
        [_w(ks[5], D_MODEL, HDK), _w(ks[6], D_MODEL, HDV)], axis=1)
    return dict(
        sa_wqkv=sa_wqkv, sa_bqkv=zeros(3 * HDK),
        sa_wo=_w(ks[3], HDV, D_MODEL), sa_bo=zeros(D_MODEL),
        sa_g=ones(D_MODEL), sa_b=zeros(D_MODEL),
        ca_wq=_w(ks[4], D_MODEL, HDK) * SCALE, ca_bq=zeros(HDK),
        ca_wkv=ca_wkv, ca_bkv=zeros(2 * HDK),
        ca_wo=_w(ks[7], HDV, D_MODEL), ca_bo=zeros(D_MODEL),
        ca_g=ones(D_MODEL), ca_b=zeros(D_MODEL),
        ff_w1=_w(ks[8], D_MODEL, D_FF), ff_b1=zeros(D_FF),
        ff_w2=_w(ks[9], D_FF, D_MODEL), ff_b2=zeros(D_MODEL),
        ff_g=ones(D_MODEL), ff_b=zeros(D_MODEL),
    )


if __name__ == "__main__":
    B, S_DEC, S_ENC = 2, 8, 8

    root = jax.random.PRNGKey(0)
    kp, kd, ke = jax.random.split(root, 3)
    params = init_params(kp)

    dec_input = jax.random.normal(kd, (B, S_DEC, D_MODEL), jnp.float32)
    enc_output = jax.random.normal(ke, (B, S_ENC, D_MODEL), jnp.float32)

    # non-pad mask: last decoder position of batch 1 is padding
    non_pad = jnp.ones((B, S_DEC, 1), jnp.float32).at[1, -1, 0].set(0.0)

    # self-attention mask: causal (1.0 == masked out)
    causal = jnp.triu(jnp.ones((S_DEC, S_DEC), jnp.float32), k=1)
    attn_self_mask = jnp.broadcast_to(causal, (B, S_DEC, S_DEC))

    # enc-dec attention mask: nothing masked
    enc_dec_attn_mask = jnp.zeros((B, S_DEC, S_ENC), jnp.float32)

    fwd = jax.jit(decoder_transformer_layer)
    out = fwd(params, dec_input, enc_output, non_pad, attn_self_mask,
              enc_dec_attn_mask)
    jax.block_until_ready(out)
    assert out.shape == (B, S_DEC, D_MODEL)
    print("KERNEL_OK")
</pallas_src>

<mosaic_0001>
module attributes {stable_mosaic.version = 11 : i64} {
  func.func @_decoder_layer_kernel(%arg0: i32, %arg1: memref<16x32xf32, #tpu.memory_space<vmem>>, %arg2: memref<16x32xf32, #tpu.memory_space<vmem>>, %arg3: memref<16x1xf32, #tpu.memory_space<vmem>>, %arg4: memref<2x8x8xf32, #tpu.memory_space<vmem>>, %arg5: memref<2x8x8xf32, #tpu.memory_space<vmem>>, %arg6: memref<32x96xf32, #tpu.memory_space<vmem>>, %arg7: memref<1x96xf32, #tpu.memory_space<vmem>>, %arg8: memref<32x32xf32, #tpu.memory_space<vmem>>, %arg9: memref<1x32xf32, #tpu.memory_space<vmem>>, %arg10: memref<1x32xf32, #tpu.memory_space<vmem>>, %arg11: memref<1x32xf32, #tpu.memory_space<vmem>>, %arg12: memref<32x32xf32, #tpu.memory_space<vmem>>, %arg13: memref<1x32xf32, #tpu.memory_space<vmem>>, %arg14: memref<32x64xf32, #tpu.memory_space<vmem>>, %arg15: memref<1x64xf32, #tpu.memory_space<vmem>>, %arg16: memref<32x32xf32, #tpu.memory_space<vmem>>, %arg17: memref<1x32xf32, #tpu.memory_space<vmem>>, %arg18: memref<1x32xf32, #tpu.memory_space<vmem>>, %arg19: memref<1x32xf32, #tpu.memory_space<vmem>>, %arg20: memref<32x64xf32, #tpu.memory_space<vmem>>, %arg21: memref<1x64xf32, #tpu.memory_space<vmem>>, %arg22: memref<64x32xf32, #tpu.memory_space<vmem>>, %arg23: memref<1x32xf32, #tpu.memory_space<vmem>>, %arg24: memref<1x32xf32, #tpu.memory_space<vmem>>, %arg25: memref<1x32xf32, #tpu.memory_space<vmem>>, %arg26: memref<16x32xf32, #tpu.memory_space<vmem>>) attributes {dimension_semantics = [#tpu.dimension_semantics<parallel>], iteration_bounds = array<i64: 1>, scalar_prefetch = 0 : i64, scratch_operands = 0 : i64, tpu.core_type = #tpu.core_type<tc>, window_params = [{transform_indices = @transform_0, window_bounds = array<i64: 16, 32>}, {transform_indices = @transform_1, window_bounds = array<i64: 16, 32>}, {transform_indices = @transform_2, window_bounds = array<i64: 16, 1>}, {transform_indices = @transform_3, window_bounds = array<i64: 2, 8, 8>}, {transform_indices = @transform_4, window_bounds = array<i64: 2, 8, 8>}, {pipeline_mode = #tpu.pipeline_mode<synchronous>, transform_indices = @transform_5, window_bounds = array<i64: 32, 96>}, {pipeline_mode = #tpu.pipeline_mode<synchronous>, transform_indices = @transform_6, window_bounds = array<i64: 1, 96>}, {pipeline_mode = #tpu.pipeline_mode<synchronous>, transform_indices = @transform_7, window_bounds = array<i64: 32, 32>}, {pipeline_mode = #tpu.pipeline_mode<synchronous>, transform_indices = @transform_8, window_bounds = array<i64: 1, 32>}, {pipeline_mode = #tpu.pipeline_mode<synchronous>, transform_indices = @transform_9, window_bounds = array<i64: 1, 32>}, {pipeline_mode = #tpu.pipeline_mode<synchronous>, transform_indices = @transform_10, window_bounds = array<i64: 1, 32>}, {pipeline_mode = #tpu.pipeline_mode<synchronous>, transform_indices = @transform_11, window_bounds = array<i64: 32, 32>}, {pipeline_mode = #tpu.pipeline_mode<synchronous>, transform_indices = @transform_12, window_bounds = array<i64: 1, 32>}, {pipeline_mode = #tpu.pipeline_mode<synchronous>, transform_indices = @transform_13, window_bounds = array<i64: 32, 64>}, {pipeline_mode = #tpu.pipeline_mode<synchronous>, transform_indices = @transform_14, window_bounds = array<i64: 1, 64>}, {pipeline_mode = #tpu.pipeline_mode<synchronous>, transform_indices = @transform_15, window_bounds = array<i64: 32, 32>}, {pipeline_mode = #tpu.pipeline_mode<synchronous>, transform_indices = @transform_16, window_bounds = array<i64: 1, 32>}, {pipeline_mode = #tpu.pipeline_mode<synchronous>, transform_indices = @transform_17, window_bounds = array<i64: 1, 32>}, {pipeline_mode = #tpu.pipeline_mode<synchronous>, transform_indices = @transform_18, window_bounds = array<i64: 1, 32>}, {pipeline_mode = #tpu.pipeline_mode<synchronous>, transform_indices = @transform_19, window_bounds = array<i64: 32, 64>}, {pipeline_mode = #tpu.pipeline_mode<synchronous>, transform_indices = @transform_20, window_bounds = array<i64: 1, 64>}, {pipeline_mode = #tpu.pipeline_mode<synchronous>, transform_indices = @transform_21, window_bounds = array<i64: 64, 32>}, {pipeline_mode = #tpu.pipeline_mode<synchronous>, transform_indices = @transform_22, window_bounds = array<i64: 1, 32>}, {pipeline_mode = #tpu.pipeline_mode<synchronous>, transform_indices = @transform_23, window_bounds = array<i64: 1, 32>}, {pipeline_mode = #tpu.pipeline_mode<synchronous>, transform_indices = @transform_24, window_bounds = array<i64: 1, 32>}, {transform_indices = @transform_25, window_bounds = array<i64: 16, 32>}]} {
    %c0 = arith.constant 0 : index
    %c0_0 = arith.constant 0 : index
    %0 = vector.load %arg1[%c0, %c0_0] : memref<16x32xf32, #tpu.memory_space<vmem>>, vector<16x32xf32>
    %c0_1 = arith.constant 0 : index
    %c0_2 = arith.constant 0 : index
    %1 = vector.load %arg2[%c0_1, %c0_2] : memref<16x32xf32, #tpu.memory_space<vmem>>, vector<16x32xf32>
    %c0_3 = arith.constant 0 : index
    %c0_4 = arith.constant 0 : index
    %2 = vector.load %arg3[%c0_3, %c0_4] : memref<16x1xf32, #tpu.memory_space<vmem>>, vector<16x1xf32>
    %c0_5 = arith.constant 0 : index
    %c0_6 = arith.constant 0 : index
    %3 = vector.load %arg6[%c0_5, %c0_6] : memref<32x96xf32, #tpu.memory_space<vmem>>, vector<32x96xf32>
    %c0_7 = arith.constant 0 : index
    %c0_8 = arith.constant 0 : index
    %4 = vector.load %arg7[%c0_7, %c0_8] : memref<1x96xf32, #tpu.memory_space<vmem>>, vector<1x96xf32>
    %cst = arith.constant dense<0.000000e+00> : vector<16x96xf32>
    %5 = tpu.matmul %0, %3, %cst {dimension_numbers = #tpu.dot_dimension_numbers<[1], [0], [0], [1], [0, 0, 1, 1], [], []>} : vector<16x32xf32>, vector<32x96xf32>, vector<16x96xf32> -> vector<16x96xf32>
    %6 = vector.broadcast %4 : vector<1x96xf32> to vector<16x96xf32>
    %7 = arith.addf %5, %6 : vector<16x96xf32>
    %8 = vector.extract_strided_slice %7 {offsets = [0, 0], sizes = [16, 32], strides = [1, 1]} : vector<16x96xf32> to vector<16x32xf32>
    %9 = vector.extract_strided_slice %7 {offsets = [0, 32], sizes = [16, 32], strides = [1, 1]} : vector<16x96xf32> to vector<16x32xf32>
    %10 = vector.extract_strided_slice %7 {offsets = [0, 64], sizes = [16, 32], strides = [1, 1]} : vector<16x96xf32> to vector<16x32xf32>
    %c0_9 = arith.constant 0 : index
    %c0_10 = arith.constant 0 : index
    %11 = vector.load %arg8[%c0_9, %c0_10] : memref<32x32xf32, #tpu.memory_space<vmem>>, vector<32x32xf32>
    %12 = vector.extract_strided_slice %8 {offsets = [0, 0], sizes = [8, 32], strides = [1, 1]} : vector<16x32xf32> to vector<8x32xf32>
    %13 = vector.extract_strided_slice %9 {offsets = [0, 0], sizes = [8, 32], strides = [1, 1]} : vector<16x32xf32> to vector<8x32xf32>
    %14 = vector.extract_strided_slice %10 {offsets = [0, 0], sizes = [8, 32], strides = [1, 1]} : vector<16x32xf32> to vector<8x32xf32>
    %c0_11 = arith.constant 0 : index
    %c0_12 = arith.constant 0 : index
    %c0_13 = arith.constant 0 : index
    %15 = vector.load %arg4[%c0_11, %c0_12, %c0_13] : memref<2x8x8xf32, #tpu.memory_space<vmem>>, vector<1x8x8xf32>
    %16 = vector.shape_cast %15 : vector<1x8x8xf32> to vector<8x8xf32>
    %cst_14 = arith.constant 0.000000e+00 : f32
    %17 = vector.broadcast %cst_14 : f32 to vector<8x8xf32>
    %18 = arith.cmpf ogt, %16, %17 : vector<8x8xf32>
    %cst_15 = arith.constant 0.000000e+00 : f32
    %19 = vector.broadcast %cst_15 : f32 to vector<8x32xf32>
    %20 = vector.extract_strided_slice %12 {offsets = [0, 0], sizes = [8, 8], strides = [1, 1]} : vector<8x32xf32> to vector<8x8xf32>
    %21 = vector.extract_strided_slice %13 {offsets = [0, 0], sizes = [8, 8], strides = [1, 1]} : vector<8x32xf32> to vector<8x8xf32>
    %22 = vector.extract_strided_slice %14 {offsets = [0, 0], sizes = [8, 8], strides = [1, 1]} : vector<8x32xf32> to vector<8x8xf32>
    %cst_16 = arith.constant dense<0.000000e+00> : vector<8x8xf32>
    %23 = tpu.matmul %20, %21, %cst_16 {dimension_numbers = #tpu.dot_dimension_numbers<[1], [1], [0], [0], [0, 0, 1, 0], [], []>} : vector<8x8xf32>, vector<8x8xf32>, vector<8x8xf32> -> vector<8x8xf32>
    %cst_17 = arith.constant -1.000000e+09 : f32
    %24 = vector.broadcast %cst_17 : f32 to vector<8x8xf32>
    %25 = arith.select %18, %24, %23 : vector<8x8xi1>, vector<8x8xf32>
    %cst_18 = arith.constant dense<0xFF800000> : vector<8xf32>
    %26 = vector.multi_reduction <maximumf>, %25, %cst_18 [1] : vector<8x8xf32> to vector<8xf32>
    %27 = vector.shape_cast %26 : vector<8xf32> to vector<8x1xf32>
    %28 = vector.broadcast %27 : vector<8x1xf32> to vector<8x8xf32>
    %29 = arith.subf %25, %28 : vector<8x8xf32>
    %30 = math.exp %29 : vector<8x8xf32>
    %cst_19 = arith.constant dense<0.000000e+00> : vector<8xf32>
    %31 = vector.multi_reduction <add>, %30, %cst_19 [1] : vector<8x8xf32> to vector<8xf32>
    %32 = vector.shape_cast %31 : vector<8xf32> to vector<8x1xf32>
    %33 = tpu.reciprocal %32 {approx = true} : vector<8x1xf32> -> vector<8x1xf32>
    %34 = vector.broadcast %33 : vector<8x1xf32> to vector<8x8xf32>
    %35 = arith.mulf %30, %34 : vector<8x8xf32>
    %cst_20 = arith.constant dense<0.000000e+00> : vector<8x8xf32>
    %36 = tpu.matmul %35, %22, %cst_20 {dimension_numbers = #tpu.dot_dimension_numbers<[1], [0], [0], [1], [0, 0, 1, 1], [], []>} : vector<8x8xf32>, vector<8x8xf32>, vector<8x8xf32> -> vector<8x8xf32>
    %37 = vector.extract_strided_slice %11 {offsets = [0, 0], sizes = [8, 32], strides = [1, 1]} : vector<32x32xf32> to vector<8x32xf32>
    %cst_21 = arith.constant dense<0.000000e+00> : vector<8x32xf32>
    %38 = tpu.matmul %36, %37, %cst_21 {dimension_numbers = #tpu.dot_dimension_numbers<[1], [0], [0], [1], [0, 0, 1, 1], [], []>} : vector<8x8xf32>, vector<8x32xf32>, vector<8x32xf32> -> vector<8x32xf32>
    %39 = arith.addf %19, %38 : vector<8x32xf32>
    %40 = vector.extract_strided_slice %12 {offsets = [0, 8], sizes = [8, 8], strides = [1, 1]} : vector<8x32xf32> to vector<8x8xf32>
    %41 = vector.extract_strided_slice %13 {offsets = [0, 8], sizes = [8, 8], strides = [1, 1]} : vector<8x32xf32> to vector<8x8xf32>
    %42 = vector.extract_strided_slice %14 {offsets = [0, 8], sizes = [8, 8], strides = [1, 1]} : vector<8x32xf32> to vector<8x8xf32>
    %cst_22 = arith.constant dense<0.000000e+00> : vector<8x8xf32>
    %43 = tpu.matmul %40, %41, %cst_22 {dimension_numbers = #tpu.dot_dimension_numbers<[1], [1], [0], [0], [0, 0, 1, 0], [], []>} : vector<8x8xf32>, vector<8x8xf32>, vector<8x8xf32> -> vector<8x8xf32>
    %cst_23 = arith.constant -1.000000e+09 : f32
    %44 = vector.broadcast %cst_23 : f32 to vector<8x8xf32>
    %45 = arith.select %18, %44, %43 : vector<8x8xi1>, vector<8x8xf32>
    %cst_24 = arith.constant dense<0xFF800000> : vector<8xf32>
    %46 = vector.multi_reduction <maximumf>, %45, %cst_24 [1] : vector<8x8xf32> to vector<8xf32>
    %47 = vector.shape_cast %46 : vector<8xf32> to vector<8x1xf32>
    %48 = vector.broadcast %47 : vector<8x1xf32> to vector<8x8xf32>
    %49 = arith.subf %45, %48 : vector<8x8xf32>
    %50 = math.exp %49 : vector<8x8xf32>
    %cst_25 = arith.constant dense<0.000000e+00> : vector<8xf32>
    %51 = vector.multi_reduction <add>, %50, %cst_25 [1] : vector<8x8xf32> to vector<8xf32>
    %52 = vector.shape_cast %51 : vector<8xf32> to vector<8x1xf32>
    %53 = tpu.reciprocal %52 {approx = true} : vector<8x1xf32> -> vector<8x1xf32>
    %54 = vector.broadcast %53 : vector<8x1xf32> to vector<8x8xf32>
    %55 = arith.mulf %50, %54 : vector<8x8xf32>
    %cst_26 = arith.constant dense<0.000000e+00> : vector<8x8xf32>
    %56 = tpu.matmul %55, %42, %cst_26 {dimension_numbers = #tpu.dot_dimension_numbers<[1], [0], [0], [1], [0, 0, 1, 1], [], []>} : vector<8x8xf32>, vector<8x8xf32>, vector<8x8xf32> -> vector<8x8xf32>
    %57 = vector.extract_strided_slice %11 {offsets = [8, 0], sizes = [8, 32], strides = [1, 1]} : vector<32x32xf32> to vector<8x32xf32>
    %cst_27 = arith.constant dense<0.000000e+00> : vector<8x32xf32>
    %58 = tpu.matmul %56, %57, %cst_27 {dimension_numbers = #tpu.dot_dimension_numbers<[1], [0], [0], [1], [0, 0, 1, 1], [], []>} : vector<8x8xf32>, vector<8x32xf32>, vector<8x32xf32> -> vector<8x32xf32>
    %59 = arith.addf %39, %58 : vector<8x32xf32>
    %60 = vector.extract_strided_slice %12 {offsets = [0, 16], sizes = [8, 8], strides = [1, 1]} : vector<8x32xf32> to vector<8x8xf32>
    %61 = vector.extract_strided_slice %13 {offsets = [0, 16], sizes = [8, 8], strides = [1, 1]} : vector<8x32xf32> to vector<8x8xf32>
    %62 = vector.extract_strided_slice %14 {offsets = [0, 16], sizes = [8, 8], strides = [1, 1]} : vector<8x32xf32> to vector<8x8xf32>
    %cst_28 = arith.constant dense<0.000000e+00> : vector<8x8xf32>
    %63 = tpu.matmul %60, %61, %cst_28 {dimension_numbers = #tpu.dot_dimension_numbers<[1], [1], [0], [0], [0, 0, 1, 0], [], []>} : vector<8x8xf32>, vector<8x8xf32>, vector<8x8xf32> -> vector<8x8xf32>
    %cst_29 = arith.constant -1.000000e+09 : f32
    %64 = vector.broadcast %cst_29 : f32 to vector<8x8xf32>
    %65 = arith.select %18, %64, %63 : vector<8x8xi1>, vector<8x8xf32>
    %cst_30 = arith.constant dense<0xFF800000> : vector<8xf32>
    %66 = vector.multi_reduction <maximumf>, %65, %cst_30 [1] : vector<8x8xf32> to vector<8xf32>
    %67 = vector.shape_cast %66 : vector<8xf32> to vector<8x1xf32>
    %68 = vector.broadcast %67 : vector<8x1xf32> to vector<8x8xf32>
    %69 = arith.subf %65, %68 : vector<8x8xf32>
    %70 = math.exp %69 : vector<8x8xf32>
    %cst_31 = arith.constant dense<0.000000e+00> : vector<8xf32>
    %71 = vector.multi_reduction <add>, %70, %cst_31 [1] : vector<8x8xf32> to vector<8xf32>
    %72 = vector.shape_cast %71 : vector<8xf32> to vector<8x1xf32>
    %73 = tpu.reciprocal %72 {approx = true} : vector<8x1xf32> -> vector<8x1xf32>
    %74 = vector.broadcast %73 : vector<8x1xf32> to vector<8x8xf32>
    %75 = arith.mulf %70, %74 : vector<8x8xf32>
    %cst_32 = arith.constant dense<0.000000e+00> : vector<8x8xf32>
    %76 = tpu.matmul %75, %62, %cst_32 {dimension_numbers = #tpu.dot_dimension_numbers<[1], [0], [0], [1], [0, 0, 1, 1], [], []>} : vector<8x8xf32>, vector<8x8xf32>, vector<8x8xf32> -> vector<8x8xf32>
    %77 = vector.extract_strided_slice %11 {offsets = [16, 0], sizes = [8, 32], strides = [1, 1]} : vector<32x32xf32> to vector<8x32xf32>
    %cst_33 = arith.constant dense<0.000000e+00> : vector<8x32xf32>
    %78 = tpu.matmul %76, %77, %cst_33 {dimension_numbers = #tpu.dot_dimension_numbers<[1], [0], [0], [1], [0, 0, 1, 1], [], []>} : vector<8x8xf32>, vector<8x32xf32>, vector<8x32xf32> -> vector<8x32xf32>
    %79 = arith.addf %59, %78 : vector<8x32xf32>
    %80 = vector.extract_strided_slice %12 {offsets = [0, 24], sizes = [8, 8], strides = [1, 1]} : vector<8x32xf32> to vector<8x8xf32>
    %81 = vector.extract_strided_slice %13 {offsets = [0, 24], sizes = [8, 8], strides = [1, 1]} : vector<8x32xf32> to vector<8x8xf32>
    %82 = vector.extract_strided_slice %14 {offsets = [0, 24], sizes = [8, 8], strides = [1, 1]} : vector<8x32xf32> to vector<8x8xf32>
    %cst_34 = arith.constant dense<0.000000e+00> : vector<8x8xf32>
    %83 = tpu.matmul %80, %81, %cst_34 {dimension_numbers = #tpu.dot_dimension_numbers<[1], [1], [0], [0], [0, 0, 1, 0], [], []>} : vector<8x8xf32>, vector<8x8xf32>, vector<8x8xf32> -> vector<8x8xf32>
    %cst_35 = arith.constant -1.000000e+09 : f32
    %84 = vector.broadcast %cst_35 : f32 to vector<8x8xf32>
    %85 = arith.select %18, %84, %83 : vector<8x8xi1>, vector<8x8xf32>
    %cst_36 = arith.constant dense<0xFF800000> : vector<8xf32>
    %86 = vector.multi_reduction <maximumf>, %85, %cst_36 [1] : vector<8x8xf32> to vector<8xf32>
    %87 = vector.shape_cast %86 : vector<8xf32> to vector<8x1xf32>
    %88 = vector.broadcast %87 : vector<8x1xf32> to vector<8x8xf32>
    %89 = arith.subf %85, %88 : vector<8x8xf32>
    %90 = math.exp %89 : vector<8x8xf32>
    %cst_37 = arith.constant dense<0.000000e+00> : vector<8xf32>
    %91 = vector.multi_reduction <add>, %90, %cst_37 [1] : vector<8x8xf32> to vector<8xf32>
    %92 = vector.shape_cast %91 : vector<8xf32> to vector<8x1xf32>
    %93 = tpu.reciprocal %92 {approx = true} : vector<8x1xf32> -> vector<8x1xf32>
    %94 = vector.broadcast %93 : vector<8x1xf32> to vector<8x8xf32>
    %95 = arith.mulf %90, %94 : vector<8x8xf32>
    %cst_38 = arith.constant dense<0.000000e+00> : vector<8x8xf32>
    %96 = tpu.matmul %95, %82, %cst_38 {dimension_numbers = #tpu.dot_dimension_numbers<[1], [0], [0], [1], [0, 0, 1, 1], [], []>} : vector<8x8xf32>, vector<8x8xf32>, vector<8x8xf32> -> vector<8x8xf32>
    %97 = vector.extract_strided_slice %11 {offsets = [24, 0], sizes = [8, 32], strides = [1, 1]} : vector<32x32xf32> to vector<8x32xf32>
    %cst_39 = arith.constant dense<0.000000e+00> : vector<8x32xf32>
    %98 = tpu.matmul %96, %97, %cst_39 {dimension_numbers = #tpu.dot_dimension_numbers<[1], [0], [0], [1], [0, 0, 1, 1], [], []>} : vector<8x8xf32>, vector<8x32xf32>, vector<8x32xf32> -> vector<8x32xf32>
    %99 = arith.addf %79, %98 : vector<8x32xf32>
    %100 = vector.extract_strided_slice %8 {offsets = [8, 0], sizes = [8, 32], strides = [1, 1]} : vector<16x32xf32> to vector<8x32xf32>
    %101 = vector.extract_strided_slice %9 {offsets = [8, 0], sizes = [8, 32], strides = [1, 1]} : vector<16x32xf32> to vector<8x32xf32>
    %102 = vector.extract_strided_slice %10 {offsets = [8, 0], sizes = [8, 32], strides = [1, 1]} : vector<16x32xf32> to vector<8x32xf32>
    %c1 = arith.constant 1 : index
    %c0_40 = arith.constant 0 : index
    %c0_41 = arith.constant 0 : index
    %103 = vector.load %arg4[%c1, %c0_40, %c0_41] : memref<2x8x8xf32, #tpu.memory_space<vmem>>, vector<1x8x8xf32>
    %104 = vector.shape_cast %103 : vector<1x8x8xf32> to vector<8x8xf32>
    %cst_42 = arith.constant 0.000000e+00 : f32
    %105 = vector.broadcast %cst_42 : f32 to vector<8x8xf32>
    %106 = arith.cmpf ogt, %104, %105 : vector<8x8xf32>
    %cst_43 = arith.constant 0.000000e+00 : f32
    %107 = vector.broadcast %cst_43 : f32 to vector<8x32xf32>
    %108 = vector.extract_strided_slice %100 {offsets = [0, 0], sizes = [8, 8], strides = [1, 1]} : vector<8x32xf32> to vector<8x8xf32>
    %109 = vector.extract_strided_slice %101 {offsets = [0, 0], sizes = [8, 8], strides = [1, 1]} : vector<8x32xf32> to vector<8x8xf32>
    %110 = vector.extract_strided_slice %102 {offsets = [0, 0], sizes = [8, 8], strides = [1, 1]} : vector<8x32xf32> to vector<8x8xf32>
    %cst_44 = arith.constant dense<0.000000e+00> : vector<8x8xf32>
    %111 = tpu.matmul %108, %109, %cst_44 {dimension_numbers = #tpu.dot_dimension_numbers<[1], [1], [0], [0], [0, 0, 1, 0], [], []>} : vector<8x8xf32>, vector<8x8xf32>, vector<8x8xf32> -> vector<8x8xf32>
    %cst_45 = arith.constant -1.000000e+09 : f32
    %112 = vector.broadcast %cst_45 : f32 to vector<8x8xf32>
    %113 = arith.select %106, %112, %111 : vector<8x8xi1>, vector<8x8xf32>
    %cst_46 = arith.constant dense<0xFF800000> : vector<8xf32>
    %114 = vector.multi_reduction <maximumf>, %113, %cst_46 [1] : vector<8x8xf32> to vector<8xf32>
    %115 = vector.shape_cast %114 : vector<8xf32> to vector<8x1xf32>
    %116 = vector.broadcast %115 : vector<8x1xf32> to vector<8x8xf32>
    %117 = arith.subf %113, %116 : vector<8x8xf32>
    %118 = math.exp %117 : vector<8x8xf32>
    %cst_47 = arith.constant dense<0.000000e+00> : vector<8xf32>
    %119 = vector.multi_reduction <add>, %118, %cst_47 [1] : vector<8x8xf32> to vector<8xf32>
    %120 = vector.shape_cast %119 : vector<8xf32> to vector<8x1xf32>
    %121 = tpu.reciprocal %120 {approx = true} : vector<8x1xf32> -> vector<8x1xf32>
    %122 = vector.broadcast %121 : vector<8x1xf32> to vector<8x8xf32>
    %123 = arith.mulf %118, %122 : vector<8x8xf32>
    %cst_48 = arith.constant dense<0.000000e+00> : vector<8x8xf32>
    %124 = tpu.matmul %123, %110, %cst_48 {dimension_numbers = #tpu.dot_dimension_numbers<[1], [0], [0], [1], [0, 0, 1, 1], [], []>} : vector<8x8xf32>, vector<8x8xf32>, vector<8x8xf32> -> vector<8x8xf32>
    %125 = vector.extract_strided_slice %11 {offsets = [0, 0], sizes = [8, 32], strides = [1, 1]} : vector<32x32xf32> to vector<8x32xf32>
    %cst_49 = arith.constant dense<0.000000e+00> : vector<8x32xf32>
    %126 = tpu.matmul %124, %125, %cst_49 {dimension_numbers = #tpu.dot_dimension_numbers<[1], [0], [0], [1], [0, 0, 1, 1], [], []>} : vector<8x8xf32>, vector<8x32xf32>, vector<8x32xf32> -> vector<8x32xf32>
    %127 = arith.addf %107, %126 : vector<8x32xf32>
    %128 = vector.extract_strided_slice %100 {offsets = [0, 8], sizes = [8, 8], strides = [1, 1]} : vector<8x32xf32> to vector<8x8xf32>
    %129 = vector.extract_strided_slice %101 {offsets = [0, 8], sizes = [8, 8], strides = [1, 1]} : vector<8x32xf32> to vector<8x8xf32>
    %130 = vector.extract_strided_slice %102 {offsets = [0, 8], sizes = [8, 8], strides = [1, 1]} : vector<8x32xf32> to vector<8x8xf32>
    %cst_50 = arith.constant dense<0.000000e+00> : vector<8x8xf32>
    %131 = tpu.matmul %128, %129, %cst_50 {dimension_numbers = #tpu.dot_dimension_numbers<[1], [1], [0], [0], [0, 0, 1, 0], [], []>} : vector<8x8xf32>, vector<8x8xf32>, vector<8x8xf32> -> vector<8x8xf32>
    %cst_51 = arith.constant -1.000000e+09 : f32
    %132 = vector.broadcast %cst_51 : f32 to vector<8x8xf32>
    %133 = arith.select %106, %132, %131 : vector<8x8xi1>, vector<8x8xf32>
    %cst_52 = arith.constant dense<0xFF800000> : vector<8xf32>
    %134 = vector.multi_reduction <maximumf>, %133, %cst_52 [1] : vector<8x8xf32> to vector<8xf32>
    %135 = vector.shape_cast %134 : vector<8xf32> to vector<8x1xf32>
    %136 = vector.broadcast %135 : vector<8x1xf32> to vector<8x8xf32>
    %137 = arith.subf %133, %136 : vector<8x8xf32>
    %138 = math.exp %137 : vector<8x8xf32>
    %cst_53 = arith.constant dense<0.000000e+00> : vector<8xf32>
    %139 = vector.multi_reduction <add>, %138, %cst_53 [1] : vector<8x8xf32> to vector<8xf32>
    %140 = vector.shape_cast %139 : vector<8xf32> to vector<8x1xf32>
    %141 = tpu.reciprocal %140 {approx = true} : vector<8x1xf32> -> vector<8x1xf32>
    %142 = vector.broadcast %141 : vector<8x1xf32> to vector<8x8xf32>
    %143 = arith.mulf %138, %142 : vector<8x8xf32>
    %cst_54 = arith.constant dense<0.000000e+00> : vector<8x8xf32>
    %144 = tpu.matmul %143, %130, %cst_54 {dimension_numbers = #tpu.dot_dimension_numbers<[1], [0], [0], [1], [0, 0, 1, 1], [], []>} : vector<8x8xf32>, vector<8x8xf32>, vector<8x8xf32> -> vector<8x8xf32>
    %145 = vector.extract_strided_slice %11 {offsets = [8, 0], sizes = [8, 32], strides = [1, 1]} : vector<32x32xf32> to vector<8x32xf32>
    %cst_55 = arith.constant dense<0.000000e+00> : vector<8x32xf32>
    %146 = tpu.matmul %144, %145, %cst_55 {dimension_numbers = #tpu.dot_dimension_numbers<[1], [0], [0], [1], [0, 0, 1, 1], [], []>} : vector<8x8xf32>, vector<8x32xf32>, vector<8x32xf32> -> vector<8x32xf32>
    %147 = arith.addf %127, %146 : vector<8x32xf32>
    %148 = vector.extract_strided_slice %100 {offsets = [0, 16], sizes = [8, 8], strides = [1, 1]} : vector<8x32xf32> to vector<8x8xf32>
    %149 = vector.extract_strided_slice %101 {offsets = [0, 16], sizes = [8, 8], strides = [1, 1]} : vector<8x32xf32> to vector<8x8xf32>
    %150 = vector.extract_strided_slice %102 {offsets = [0, 16], sizes = [8, 8], strides = [1, 1]} : vector<8x32xf32> to vector<8x8xf32>
    %cst_56 = arith.constant dense<0.000000e+00> : vector<8x8xf32>
    %151 = tpu.matmul %148, %149, %cst_56 {dimension_numbers = #tpu.dot_dimension_numbers<[1], [1], [0], [0], [0, 0, 1, 0], [], []>} : vector<8x8xf32>, vector<8x8xf32>, vector<8x8xf32> -> vector<8x8xf32>
    %cst_57 = arith.constant -1.000000e+09 : f32
    %152 = vector.broadcast %cst_57 : f32 to vector<8x8xf32>
    %153 = arith.select %106, %152, %151 : vector<8x8xi1>, vector<8x8xf32>
    %cst_58 = arith.constant dense<0xFF800000> : vector<8xf32>
    %154 = vector.multi_reduction <maximumf>, %153, %cst_58 [1] : vector<8x8xf32> to vector<8xf32>
    %155 = vector.shape_cast %154 : vector<8xf32> to vector<8x1xf32>
    %156 = vector.broadcast %155 : vector<8x1xf32> to vector<8x8xf32>
    %157 = arith.subf %153, %156 : vector<8x8xf32>
    %158 = math.exp %157 : vector<8x8xf32>
    %cst_59 = arith.constant dense<0.000000e+00> : vector<8xf32>
    %159 = vector.multi_reduction <add>, %158, %cst_59 [1] : vector<8x8xf32> to vector<8xf32>
    %160 = vector.shape_cast %159 : vector<8xf32> to vector<8x1xf32>
    %161 = tpu.reciprocal %160 {approx = true} : vector<8x1xf32> -> vector<8x1xf32>
    %162 = vector.broadcast %161 : vector<8x1xf32> to vector<8x8xf32>
    %163 = arith.mulf %158, %162 : vector<8x8xf32>
    %cst_60 = arith.constant dense<0.000000e+00> : vector<8x8xf32>
    %164 = tpu.matmul %163, %150, %cst_60 {dimension_numbers = #tpu.dot_dimension_numbers<[1], [0], [0], [1], [0, 0, 1, 1], [], []>} : vector<8x8xf32>, vector<8x8xf32>, vector<8x8xf32> -> vector<8x8xf32>
    %165 = vector.extract_strided_slice %11 {offsets = [16, 0], sizes = [8, 32], strides = [1, 1]} : vector<32x32xf32> to vector<8x32xf32>
    %cst_61 = arith.constant dense<0.000000e+00> : vector<8x32xf32>
    %166 = tpu.matmul %164, %165, %cst_61 {dimension_numbers = #tpu.dot_dimension_numbers<[1], [0], [0], [1], [0, 0, 1, 1], [], []>} : vector<8x8xf32>, vector<8x32xf32>, vector<8x32xf32> -> vector<8x32xf32>
    %167 = arith.addf %147, %166 : vector<8x32xf32>
    %168 = vector.extract_strided_slice %100 {offsets = [0, 24], sizes = [8, 8], strides = [1, 1]} : vector<8x32xf32> to vector<8x8xf32>
    %169 = vector.extract_strided_slice %101 {offsets = [0, 24], sizes = [8, 8], strides = [1, 1]} : vector<8x32xf32> to vector<8x8xf32>
    %170 = vector.extract_strided_slice %102 {offsets = [0, 24], sizes = [8, 8], strides = [1, 1]} : vector<8x32xf32> to vector<8x8xf32>
    %cst_62 = arith.constant dense<0.000000e+00> : vector<8x8xf32>
    %171 = tpu.matmul %168, %169, %cst_62 {dimension_numbers = #tpu.dot_dimension_numbers<[1], [1], [0], [0], [0, 0, 1, 0], [], []>} : vector<8x8xf32>, vector<8x8xf32>, vector<8x8xf32> -> vector<8x8xf32>
    %cst_63 = arith.constant -1.000000e+09 : f32
    %172 = vector.broadcast %cst_63 : f32 to vector<8x8xf32>
    %173 = arith.select %106, %172, %171 : vector<8x8xi1>, vector<8x8xf32>
    %cst_64 = arith.constant dense<0xFF800000> : vector<8xf32>
    %174 = vector.multi_reduction <maximumf>, %173, %cst_64 [1] : vector<8x8xf32> to vector<8xf32>
    %175 = vector.shape_cast %174 : vector<8xf32> to vector<8x1xf32>
    %176 = vector.broadcast %175 : vector<8x1xf32> to vector<8x8xf32>
    %177 = arith.subf %173, %176 : vector<8x8xf32>
    %178 = math.exp %177 : vector<8x8xf32>
    %cst_65 = arith.constant dense<0.000000e+00> : vector<8xf32>
    %179 = vector.multi_reduction <add>, %178, %cst_65 [1] : vector<8x8xf32> to vector<8xf32>
    %180 = vector.shape_cast %179 : vector<8xf32> to vector<8x1xf32>
    %181 = tpu.reciprocal %180 {approx = true} : vector<8x1xf32> -> vector<8x1xf32>
    %182 = vector.broadcast %181 : vector<8x1xf32> to vector<8x8xf32>
    %183 = arith.mulf %178, %182 : vector<8x8xf32>
    %cst_66 = arith.constant dense<0.000000e+00> : vector<8x8xf32>
    %184 = tpu.matmul %183, %170, %cst_66 {dimension_numbers = #tpu.dot_dimension_numbers<[1], [0], [0], [1], [0, 0, 1, 1], [], []>} : vector<8x8xf32>, vector<8x8xf32>, vector<8x8xf32> -> vector<8x8xf32>
    %185 = vector.extract_strided_slice %11 {offsets = [24, 0], sizes = [8, 32], strides = [1, 1]} : vector<32x32xf32> to vector<8x32xf32>
    %cst_67 = arith.constant dense<0.000000e+00> : vector<8x32xf32>
    %186 = tpu.matmul %184, %185, %cst_67 {dimension_numbers = #tpu.dot_dimension_numbers<[1], [0], [0], [1], [0, 0, 1, 1], [], []>} : vector<8x8xf32>, vector<8x32xf32>, vector<8x32xf32> -> vector<8x32xf32>
    %187 = arith.addf %167, %186 : vector<8x32xf32>
    %188 = tpu.concatenate %99, %187 in 0 : vector<8x32xf32>, vector<8x32xf32> -> vector<16x32xf32>
    %c0_68 = arith.constant 0 : index
    %c0_69 = arith.constant 0 : index
    %189 = vector.load %arg9[%c0_68, %c0_69] : memref<1x32xf32, #tpu.memory_space<vmem>>, vector<1x32xf32>
    %190 = vector.broadcast %189 : vector<1x32xf32> to vector<16x32xf32>
    %191 = arith.addf %188, %190 : vector<16x32xf32>
    %c0_70 = arith.constant 0 : index
    %c0_71 = arith.constant 0 : index
    %192 = vector.load %arg10[%c0_70, %c0_71] : memref<1x32xf32, #tpu.memory_space<vmem>>, vector<1x32xf32>
    %c0_72 = arith.constant 0 : index
    %c0_73 = arith.constant 0 : index
    %193 = vector.load %arg11[%c0_72, %c0_73] : memref<1x32xf32, #tpu.memory_space<vmem>>, vector<1x32xf32>
    %194 = arith.addf %191, %0 : vector<16x32xf32>
    %cst_74 = arith.constant dense<0.000000e+00> : vector<16xf32>
    %195 = vector.multi_reduction <add>, %194, %cst_74 [1] : vector<16x32xf32> to vector<16xf32>
    %196 = vector.shape_cast %195 : vector<16xf32> to vector<16x1xf32>
    %cst_75 = arith.constant 3.200000e+01 : f32
    %197 = vector.broadcast %cst_75 : f32 to vector<16x1xf32>
    %198 = arith.divf %196, %197 : vector<16x1xf32>
    %199 = vector.broadcast %198 : vector<16x1xf32> to vector<16x32xf32>
    %200 = arith.subf %194, %199 : vector<16x32xf32>
    %201 = arith.mulf %200, %200 : vector<16x32xf32>
    %cst_76 = arith.constant dense<0.000000e+00> : vector<16xf32>
    %202 = vector.multi_reduction <add>, %201, %cst_76 [1] : vector<16x32xf32> to vector<16xf32>
    %203 = vector.shape_cast %202 : vector<16xf32> to vector<16x1xf32>
    %cst_77 = arith.constant 3.200000e+01 : f32
    %204 = vector.broadcast %cst_77 : f32 to vector<16x1xf32>
    %205 = arith.divf %203, %204 : vector<16x1xf32>
    %cst_78 = arith.constant 9.99999974E-6 : f32
    %206 = vector.broadcast %cst_78 : f32 to vector<16x1xf32>
    %207 = arith.addf %205, %206 : vector<16x1xf32>
    %208 = math.rsqrt %207 : vector<16x1xf32>
    %209 = vector.broadcast %208 : vector<16x1xf32> to vector<16x32xf32>
    %210 = arith.mulf %200, %209 : vector<16x32xf32>
    %211 = vector.broadcast %192 : vector<1x32xf32> to vector<16x32xf32>
    %212 = arith.mulf %210, %211 : vector<16x32xf32>
    %213 = vector.broadcast %193 : vector<1x32xf32> to vector<16x32xf32>
    %214 = arith.addf %212, %213 : vector<16x32xf32>
    %215 = vector.broadcast %2 : vector<16x1xf32> to vector<16x32xf32>
    %216 = arith.mulf %214, %215 : vector<16x32xf32>
    %c0_79 = arith.constant 0 : index
    %c0_80 = arith.constant 0 : index
    %217 = vector.load %arg12[%c0_79, %c0_80] : memref<32x32xf32, #tpu.memory_space<vmem>>, vector<32x32xf32>
    %c0_81 = arith.constant 0 : index
    %c0_82 = arith.constant 0 : index
    %218 = vector.load %arg13[%c0_81, %c0_82] : memref<1x32xf32, #tpu.memory_space<vmem>>, vector<1x32xf32>
    %cst_83 = arith.constant dense<0.000000e+00> : vector<16x32xf32>
    %219 = tpu.matmul %216, %217, %cst_83 {dimension_numbers = #tpu.dot_dimension_numbers<[1], [0], [0], [1], [0, 0, 1, 1], [], []>} : vector<16x32xf32>, vector<32x32xf32>, vector<16x32xf32> -> vector<16x32xf32>
    %220 = vector.broadcast %218 : vector<1x32xf32> to vector<16x32xf32>
    %221 = arith.addf %219, %220 : vector<16x32xf32>
    %c0_84 = arith.constant 0 : index
    %c0_85 = arith.constant 0 : index
    %222 = vector.load %arg14[%c0_84, %c0_85] : memref<32x64xf32, #tpu.memory_space<vmem>>, vector<32x64xf32>
    %c0_86 = arith.constant 0 : index
    %c0_87 = arith.constant 0 : index
    %223 = vector.load %arg15[%c0_86, %c0_87] : memref<1x64xf32, #tpu.memory_space<vmem>>, vector<1x64xf32>
    %cst_88 = arith.constant dense<0.000000e+00> : vector<16x64xf32>
    %224 = tpu.matmul %1, %222, %cst_88 {dimension_numbers = #tpu.dot_dimension_numbers<[1], [0], [0], [1], [0, 0, 1, 1], [], []>} : vector<16x32xf32>, vector<32x64xf32>, vector<16x64xf32> -> vector<16x64xf32>
    %225 = vector.broadcast %223 : vector<1x64xf32> to vector<16x64xf32>
    %226 = arith.addf %224, %225 : vector<16x64xf32>
    %227 = vector.extract_strided_slice %226 {offsets = [0, 0], sizes = [16, 32], strides = [1, 1]} : vector<16x64xf32> to vector<16x32xf32>
    %228 = vector.extract_strided_slice %226 {offsets = [0, 32], sizes = [16, 32], strides = [1, 1]} : vector<16x64xf32> to vector<16x32xf32>
    %c0_89 = arith.constant 0 : index
    %c0_90 = arith.constant 0 : index
    %229 = vector.load %arg16[%c0_89, %c0_90] : memref<32x32xf32, #tpu.memory_space<vmem>>, vector<32x32xf32>
    %230 = vector.extract_strided_slice %221 {offsets = [0, 0], sizes = [8, 32], strides = [1, 1]} : vector<16x32xf32> to vector<8x32xf32>
    %231 = vector.extract_strided_slice %227 {offsets = [0, 0], sizes = [8, 32], strides = [1, 1]} : vector<16x32xf32> to vector<8x32xf32>
    %232 = vector.extract_strided_slice %228 {offsets = [0, 0], sizes = [8, 32], strides = [1, 1]} : vector<16x32xf32> to vector<8x32xf32>
    %c0_91 = arith.constant 0 : index
    %c0_92 = arith.constant 0 : index
    %c0_93 = arith.constant 0 : index
    %233 = vector.load %arg5[%c0_91, %c0_92, %c0_93] : memref<2x8x8xf32, #tpu.memory_space<vmem>>, vector<1x8x8xf32>
    %234 = vector.shape_cast %233 : vector<1x8x8xf32> to vector<8x8xf32>
    %cst_94 = arith.constant 0.000000e+00 : f32
    %235 = vector.broadcast %cst_94 : f32 to vector<8x8xf32>
    %236 = arith.cmpf ogt, %234, %235 : vector<8x8xf32>
    %cst_95 = arith.constant 0.000000e+00 : f32
    %237 = vector.broadcast %cst_95 : f32 to vector<8x32xf32>
    %238 = vector.extract_strided_slice %230 {offsets = [0, 0], sizes = [8, 8], strides = [1, 1]} : vector<8x32xf32> to vector<8x8xf32>
    %239 = vector.extract_strided_slice %231 {offsets = [0, 0], sizes = [8, 8], strides = [1, 1]} : vector<8x32xf32> to vector<8x8xf32>
    %240 = vector.extract_strided_slice %232 {offsets = [0, 0], sizes = [8, 8], strides = [1, 1]} : vector<8x32xf32> to vector<8x8xf32>
    %cst_96 = arith.constant dense<0.000000e+00> : vector<8x8xf32>
    %241 = tpu.matmul %238, %239, %cst_96 {dimension_numbers = #tpu.dot_dimension_numbers<[1], [1], [0], [0], [0, 0, 1, 0], [], []>} : vector<8x8xf32>, vector<8x8xf32>, vector<8x8xf32> -> vector<8x8xf32>
    %cst_97 = arith.constant -1.000000e+09 : f32
    %242 = vector.broadcast %cst_97 : f32 to vector<8x8xf32>
    %243 = arith.select %236, %242, %241 : vector<8x8xi1>, vector<8x8xf32>
    %cst_98 = arith.constant dense<0xFF800000> : vector<8xf32>
    %244 = vector.multi_reduction <maximumf>, %243, %cst_98 [1] : vector<8x8xf32> to vector<8xf32>
    %245 = vector.shape_cast %244 : vector<8xf32> to vector<8x1xf32>
    %246 = vector.broadcast %245 : vector<8x1xf32> to vector<8x8xf32>
    %247 = arith.subf %243, %246 : vector<8x8xf32>
    %248 = math.exp %247 : vector<8x8xf32>
    %cst_99 = arith.constant dense<0.000000e+00> : vector<8xf32>
    %249 = vector.multi_reduction <add>, %248, %cst_99 [1] : vector<8x8xf32> to vector<8xf32>
    %250 = vector.shape_cast %249 : vector<8xf32> to vector<8x1xf32>
    %251 = tpu.reciprocal %250 {approx = true} : vector<8x1xf32> -> vector<8x1xf32>
    %252 = vector.broadcast %251 : vector<8x1xf32> to vector<8x8xf32>
    %253 = arith.mulf %248, %252 : vector<8x8xf32>
    %cst_100 = arith.constant dense<0.000000e+00> : vector<8x8xf32>
    %254 = tpu.matmul %253, %240, %cst_100 {dimension_numbers = #tpu.dot_dimension_numbers<[1], [0], [0], [1], [0, 0, 1, 1], [], []>} : vector<8x8xf32>, vector<8x8xf32>, vector<8x8xf32> -> vector<8x8xf32>
    %255 = vector.extract_strided_slice %229 {offsets = [0, 0], sizes = [8, 32], strides = [1, 1]} : vector<32x32xf32> to vector<8x32xf32>
    %cst_101 = arith.constant dense<0.000000e+00> : vector<8x32xf32>
    %256 = tpu.matmul %254, %255, %cst_101 {dimension_numbers = #tpu.dot_dimension_numbers<[1], [0], [0], [1], [0, 0, 1, 1], [], []>} : vector<8x8xf32>, vector<8x32xf32>, vector<8x32xf32> -> vector<8x32xf32>
    %257 = arith.addf %237, %256 : vector<8x32xf32>
    %258 = vector.extract_strided_slice %230 {offsets = [0, 8], sizes = [8, 8], strides = [1, 1]} : vector<8x32xf32> to vector<8x8xf32>
    %259 = vector.extract_strided_slice %231 {offsets = [0, 8], sizes = [8, 8], strides = [1, 1]} : vector<8x32xf32> to vector<8x8xf32>
    %260 = vector.extract_strided_slice %232 {offsets = [0, 8], sizes = [8, 8], strides = [1, 1]} : vector<8x32xf32> to vector<8x8xf32>
    %cst_102 = arith.constant dense<0.000000e+00> : vector<8x8xf32>
    %261 = tpu.matmul %258, %259, %cst_102 {dimension_numbers = #tpu.dot_dimension_numbers<[1], [1], [0], [0], [0, 0, 1, 0], [], []>} : vector<8x8xf32>, vector<8x8xf32>, vector<8x8xf32> -> vector<8x8xf32>
    %cst_103 = arith.constant -1.000000e+09 : f32
    %262 = vector.broadcast %cst_103 : f32 to vector<8x8xf32>
    %263 = arith.select %236, %262, %261 : vector<8x8xi1>, vector<8x8xf32>
    %cst_104 = arith.constant dense<0xFF800000> : vector<8xf32>
    %264 = vector.multi_reduction <maximumf>, %263, %cst_104 [1] : vector<8x8xf32> to vector<8xf32>
    %265 = vector.shape_cast %264 : vector<8xf32> to vector<8x1xf32>
    %266 = vector.broadcast %265 : vector<8x1xf32> to vector<8x8xf32>
    %267 = arith.subf %263, %266 : vector<8x8xf32>
    %268 = math.exp %267 : vector<8x8xf32>
    %cst_105 = arith.constant dense<0.000000e+00> : vector<8xf32>
    %269 = vector.multi_reduction <add>, %268, %cst_105 [1] : vector<8x8xf32> to vector<8xf32>
    %270 = vector.shape_cast %269 : vector<8xf32> to vector<8x1xf32>
    %271 = tpu.reciprocal %270 {approx = true} : vector<8x1xf32> -> vector<8x1xf32>
    %272 = vector.broadcast %271 : vector<8x1xf32> to vector<8x8xf32>
    %273 = arith.mulf %268, %272 : vector<8x8xf32>
    %cst_106 = arith.constant dense<0.000000e+00> : vector<8x8xf32>
    %274 = tpu.matmul %273, %260, %cst_106 {dimension_numbers = #tpu.dot_dimension_numbers<[1], [0], [0], [1], [0, 0, 1, 1], [], []>} : vector<8x8xf32>, vector<8x8xf32>, vector<8x8xf32> -> vector<8x8xf32>
    %275 = vector.extract_strided_slice %229 {offsets = [8, 0], sizes = [8, 32], strides = [1, 1]} : vector<32x32xf32> to vector<8x32xf32>
    %cst_107 = arith.constant dense<0.000000e+00> : vector<8x32xf32>
    %276 = tpu.matmul %274, %275, %cst_107 {dimension_numbers = #tpu.dot_dimension_numbers<[1], [0], [0], [1], [0, 0, 1, 1], [], []>} : vector<8x8xf32>, vector<8x32xf32>, vector<8x32xf32> -> vector<8x32xf32>
    %277 = arith.addf %257, %276 : vector<8x32xf32>
    %278 = vector.extract_strided_slice %230 {offsets = [0, 16], sizes = [8, 8], strides = [1, 1]} : vector<8x32xf32> to vector<8x8xf32>
    %279 = vector.extract_strided_slice %231 {offsets = [0, 16], sizes = [8, 8], strides = [1, 1]} : vector<8x32xf32> to vector<8x8xf32>
    %280 = vector.extract_strided_slice %232 {offsets = [0, 16], sizes = [8, 8], strides = [1, 1]} : vector<8x32xf32> to vector<8x8xf32>
    %cst_108 = arith.constant dense<0.000000e+00> : vector<8x8xf32>
    %281 = tpu.matmul %278, %279, %cst_108 {dimension_numbers = #tpu.dot_dimension_numbers<[1], [1], [0], [0], [0, 0, 1, 0], [], []>} : vector<8x8xf32>, vector<8x8xf32>, vector<8x8xf32> -> vector<8x8xf32>
    %cst_109 = arith.constant -1.000000e+09 : f32
    %282 = vector.broadcast %cst_109 : f32 to vector<8x8xf32>
    %283 = arith.select %236, %282, %281 : vector<8x8xi1>, vector<8x8xf32>
    %cst_110 = arith.constant dense<0xFF800000> : vector<8xf32>
    %284 = vector.multi_reduction <maximumf>, %283, %cst_110 [1] : vector<8x8xf32> to vector<8xf32>
    %285 = vector.shape_cast %284 : vector<8xf32> to vector<8x1xf32>
    %286 = vector.broadcast %285 : vector<8x1xf32> to vector<8x8xf32>
    %287 = arith.subf %283, %286 : vector<8x8xf32>
    %288 = math.exp %287 : vector<8x8xf32>
    %cst_111 = arith.constant dense<0.000000e+00> : vector<8xf32>
    %289 = vector.multi_reduction <add>, %288, %cst_111 [1] : vector<8x8xf32> to vector<8xf32>
    %290 = vector.shape_cast %289 : vector<8xf32> to vector<8x1xf32>
    %291 = tpu.reciprocal %290 {approx = true} : vector<8x1xf32> -> vector<8x1xf32>
    %292 = vector.broadcast %291 : vector<8x1xf32> to vector<8x8xf32>
    %293 = arith.mulf %288, %292 : vector<8x8xf32>
    %cst_112 = arith.constant dense<0.000000e+00> : vector<8x8xf32>
    %294 = tpu.matmul %293, %280, %cst_112 {dimension_numbers = #tpu.dot_dimension_numbers<[1], [0], [0], [1], [0, 0, 1, 1], [], []>} : vector<8x8xf32>, vector<8x8xf32>, vector<8x8xf32> -> vector<8x8xf32>
    %295 = vector.extract_strided_slice %229 {offsets = [16, 0], sizes = [8, 32], strides = [1, 1]} : vector<32x32xf32> to vector<8x32xf32>
    %cst_113 = arith.constant dense<0.000000e+00> : vector<8x32xf32>
    %296 = tpu.matmul %294, %295, %cst_113 {dimension_numbers = #tpu.dot_dimension_numbers<[1], [0], [0], [1], [0, 0, 1, 1], [], []>} : vector<8x8xf32>, vector<8x32xf32>, vector<8x32xf32> -> vector<8x32xf32>
    %297 = arith.addf %277, %296 : vector<8x32xf32>
    %298 = vector.extract_strided_slice %230 {offsets = [0, 24], sizes = [8, 8], strides = [1, 1]} : vector<8x32xf32> to vector<8x8xf32>
    %299 = vector.extract_strided_slice %231 {offsets = [0, 24], sizes = [8, 8], strides = [1, 1]} : vector<8x32xf32> to vector<8x8xf32>
    %300 = vector.extract_strided_slice %232 {offsets = [0, 24], sizes = [8, 8], strides = [1, 1]} : vector<8x32xf32> to vector<8x8xf32>
    %cst_114 = arith.constant dense<0.000000e+00> : vector<8x8xf32>
    %301 = tpu.matmul %298, %299, %cst_114 {dimension_numbers = #tpu.dot_dimension_numbers<[1], [1], [0], [0], [0, 0, 1, 0], [], []>} : vector<8x8xf32>, vector<8x8xf32>, vector<8x8xf32> -> vector<8x8xf32>
    %cst_115 = arith.constant -1.000000e+09 : f32
    %302 = vector.broadcast %cst_115 : f32 to vector<8x8xf32>
    %303 = arith.select %236, %302, %301 : vector<8x8xi1>, vector<8x8xf32>
    %cst_116 = arith.constant dense<0xFF800000> : vector<8xf32>
    %304 = vector.multi_reduction <maximumf>, %303, %cst_116 [1] : vector<8x8xf32> to vector<8xf32>
    %305 = vector.shape_cast %304 : vector<8xf32> to vector<8x1xf32>
    %306 = vector.broadcast %305 : vector<8x1xf32> to vector<8x8xf32>
    %307 = arith.subf %303, %306 : vector<8x8xf32>
    %308 = math.exp %307 : vector<8x8xf32>
    %cst_117 = arith.constant dense<0.000000e+00> : vector<8xf32>
    %309 = vector.multi_reduction <add>, %308, %cst_117 [1] : vector<8x8xf32> to vector<8xf32>
    %310 = vector.shape_cast %309 : vector<8xf32> to vector<8x1xf32>
    %311 = tpu.reciprocal %310 {approx = true} : vector<8x1xf32> -> vector<8x1xf32>
    %312 = vector.broadcast %311 : vector<8x1xf32> to vector<8x8xf32>
    %313 = arith.mulf %308, %312 : vector<8x8xf32>
    %cst_118 = arith.constant dense<0.000000e+00> : vector<8x8xf32>
    %314 = tpu.matmul %313, %300, %cst_118 {dimension_numbers = #tpu.dot_dimension_numbers<[1], [0], [0], [1], [0, 0, 1, 1], [], []>} : vector<8x8xf32>, vector<8x8xf32>, vector<8x8xf32> -> vector<8x8xf32>
    %315 = vector.extract_strided_slice %229 {offsets = [24, 0], sizes = [8, 32], strides = [1, 1]} : vector<32x32xf32> to vector<8x32xf32>
    %cst_119 = arith.constant dense<0.000000e+00> : vector<8x32xf32>
    %316 = tpu.matmul %314, %315, %cst_119 {dimension_numbers = #tpu.dot_dimension_numbers<[1], [0], [0], [1], [0, 0, 1, 1], [], []>} : vector<8x8xf32>, vector<8x32xf32>, vector<8x32xf32> -> vector<8x32xf32>
    %317 = arith.addf %297, %316 : vector<8x32xf32>
    %318 = vector.extract_strided_slice %221 {offsets = [8, 0], sizes = [8, 32], strides = [1, 1]} : vector<16x32xf32> to vector<8x32xf32>
    %319 = vector.extract_strided_slice %227 {offsets = [8, 0], sizes = [8, 32], strides = [1, 1]} : vector<16x32xf32> to vector<8x32xf32>
    %320 = vector.extract_strided_slice %228 {offsets = [8, 0], sizes = [8, 32], strides = [1, 1]} : vector<16x32xf32> to vector<8x32xf32>
    %c1_120 = arith.constant 1 : index
    %c0_121 = arith.constant 0 : index
    %c0_122 = arith.constant 0 : index
    %321 = vector.load %arg5[%c1_120, %c0_121, %c0_122] : memref<2x8x8xf32, #tpu.memory_space<vmem>>, vector<1x8x8xf32>
    %322 = vector.shape_cast %321 : vector<1x8x8xf32> to vector<8x8xf32>
    %cst_123 = arith.constant 0.000000e+00 : f32
    %323 = vector.broadcast %cst_123 : f32 to vector<8x8xf32>
    %324 = arith.cmpf ogt, %322, %323 : vector<8x8xf32>
    %cst_124 = arith.constant 0.000000e+00 : f32
    %325 = vector.broadcast %cst_124 : f32 to vector<8x32xf32>
    %326 = vector.extract_strided_slice %318 {offsets = [0, 0], sizes = [8, 8], strides = [1, 1]} : vector<8x32xf32> to vector<8x8xf32>
    %327 = vector.extract_strided_slice %319 {offsets = [0, 0], sizes = [8, 8], strides = [1, 1]} : vector<8x32xf32> to vector<8x8xf32>
    %328 = vector.extract_strided_slice %320 {offsets = [0, 0], sizes = [8, 8], strides = [1, 1]} : vector<8x32xf32> to vector<8x8xf32>
    %cst_125 = arith.constant dense<0.000000e+00> : vector<8x8xf32>
    %329 = tpu.matmul %326, %327, %cst_125 {dimension_numbers = #tpu.dot_dimension_numbers<[1], [1], [0], [0], [0, 0, 1, 0], [], []>} : vector<8x8xf32>, vector<8x8xf32>, vector<8x8xf32> -> vector<8x8xf32>
    %cst_126 = arith.constant -1.000000e+09 : f32
    %330 = vector.broadcast %cst_126 : f32 to vector<8x8xf32>
    %331 = arith.select %324, %330, %329 : vector<8x8xi1>, vector<8x8xf32>
    %cst_127 = arith.constant dense<0xFF800000> : vector<8xf32>
    %332 = vector.multi_reduction <maximumf>, %331, %cst_127 [1] : vector<8x8xf32> to vector<8xf32>
    %333 = vector.shape_cast %332 : vector<8xf32> to vector<8x1xf32>
    %334 = vector.broadcast %333 : vector<8x1xf32> to vector<8x8xf32>
    %335 = arith.subf %331, %334 : vector<8x8xf32>
    %336 = math.exp %335 : vector<8x8xf32>
    %cst_128 = arith.constant dense<0.000000e+00> : vector<8xf32>
    %337 = vector.multi_reduction <add>, %336, %cst_128 [1] : vector<8x8xf32> to vector<8xf32>
    %338 = vector.shape_cast %337 : vector<8xf32> to vector<8x1xf32>
    %339 = tpu.reciprocal %338 {approx = true} : vector<8x1xf32> -> vector<8x1xf32>
    %340 = vector.broadcast %339 : vector<8x1xf32> to vector<8x8xf32>
    %341 = arith.mulf %336, %340 : vector<8x8xf32>
    %cst_129 = arith.constant dense<0.000000e+00> : vector<8x8xf32>
    %342 = tpu.matmul %341, %328, %cst_129 {dimension_numbers = #tpu.dot_dimension_numbers<[1], [0], [0], [1], [0, 0, 1, 1], [], []>} : vector<8x8xf32>, vector<8x8xf32>, vector<8x8xf32> -> vector<8x8xf32>
    %343 = vector.extract_strided_slice %229 {offsets = [0, 0], sizes = [8, 32], strides = [1, 1]} : vector<32x32xf32> to vector<8x32xf32>
    %cst_130 = arith.constant dense<0.000000e+00> : vector<8x32xf32>
    %344 = tpu.matmul %342, %343, %cst_130 {dimension_numbers = #tpu.dot_dimension_numbers<[1], [0], [0], [1], [0, 0, 1, 1], [], []>} : vector<8x8xf32>, vector<8x32xf32>, vector<8x32xf32> -> vector<8x32xf32>
    %345 = arith.addf %325, %344 : vector<8x32xf32>
    %346 = vector.extract_strided_slice %318 {offsets = [0, 8], sizes = [8, 8], strides = [1, 1]} : vector<8x32xf32> to vector<8x8xf32>
    %347 = vector.extract_strided_slice %319 {offsets = [0, 8], sizes = [8, 8], strides = [1, 1]} : vector<8x32xf32> to vector<8x8xf32>
    %348 = vector.extract_strided_slice %320 {offsets = [0, 8], sizes = [8, 8], strides = [1, 1]} : vector<8x32xf32> to vector<8x8xf32>
    %cst_131 = arith.constant dense<0.000000e+00> : vector<8x8xf32>
    %349 = tpu.matmul %346, %347, %cst_131 {dimension_numbers = #tpu.dot_dimension_numbers<[1], [1], [0], [0], [0, 0, 1, 0], [], []>} : vector<8x8xf32>, vector<8x8xf32>, vector<8x8xf32> -> vector<8x8xf32>
    %cst_132 = arith.constant -1.000000e+09 : f32
    %350 = vector.broadcast %cst_132 : f32 to vector<8x8xf32>
    %351 = arith.select %324, %350, %349 : vector<8x8xi1>, vector<8x8xf32>
    %cst_133 = arith.constant dense<0xFF800000> : vector<8xf32>
    %352 = vector.multi_reduction <maximumf>, %351, %cst_133 [1] : vector<8x8xf32> to vector<8xf32>
    %353 = vector.shape_cast %352 : vector<8xf32> to vector<8x1xf32>
    %354 = vector.broadcast %353 : vector<8x1xf32> to vector<8x8xf32>
    %355 = arith.subf %351, %354 : vector<8x8xf32>
    %356 = math.exp %355 : vector<8x8xf32>
    %cst_134 = arith.constant dense<0.000000e+00> : vector<8xf32>
    %357 = vector.multi_reduction <add>, %356, %cst_134 [1] : vector<8x8xf32> to vector<8xf32>
    %358 = vector.shape_cast %357 : vector<8xf32> to vector<8x1xf32>
    %359 = tpu.reciprocal %358 {approx = true} : vector<8x1xf32> -> vector<8x1xf32>
    %360 = vector.broadcast %359 : vector<8x1xf32> to vector<8x8xf32>
    %361 = arith.mulf %356, %360 : vector<8x8xf32>
    %cst_135 = arith.constant dense<0.000000e+00> : vector<8x8xf32>
    %362 = tpu.matmul %361, %348, %cst_135 {dimension_numbers = #tpu.dot_dimension_numbers<[1], [0], [0], [1], [0, 0, 1, 1], [], []>} : vector<8x8xf32>, vector<8x8xf32>, vector<8x8xf32> -> vector<8x8xf32>
    %363 = vector.extract_strided_slice %229 {offsets = [8, 0], sizes = [8, 32], strides = [1, 1]} : vector<32x32xf32> to vector<8x32xf32>
    %cst_136 = arith.constant dense<0.000000e+00> : vector<8x32xf32>
    %364 = tpu.matmul %362, %363, %cst_136 {dimension_numbers = #tpu.dot_dimension_numbers<[1], [0], [0], [1], [0, 0, 1, 1], [], []>} : vector<8x8xf32>, vector<8x32xf32>, vector<8x32xf32> -> vector<8x32xf32>
    %365 = arith.addf %345, %364 : vector<8x32xf32>
    %366 = vector.extract_strided_slice %318 {offsets = [0, 16], sizes = [8, 8], strides = [1, 1]} : vector<8x32xf32> to vector<8x8xf32>
    %367 = vector.extract_strided_slice %319 {offsets = [0, 16], sizes = [8, 8], strides = [1, 1]} : vector<8x32xf32> to vector<8x8xf32>
    %368 = vector.extract_strided_slice %320 {offsets = [0, 16], sizes = [8, 8], strides = [1, 1]} : vector<8x32xf32> to vector<8x8xf32>
    %cst_137 = arith.constant dense<0.000000e+00> : vector<8x8xf32>
    %369 = tpu.matmul %366, %367, %cst_137 {dimension_numbers = #tpu.dot_dimension_numbers<[1], [1], [0], [0], [0, 0, 1, 0], [], []>} : vector<8x8xf32>, vector<8x8xf32>, vector<8x8xf32> -> vector<8x8xf32>
    %cst_138 = arith.constant -1.000000e+09 : f32
    %370 = vector.broadcast %cst_138 : f32 to vector<8x8xf32>
    %371 = arith.select %324, %370, %369 : vector<8x8xi1>, vector<8x8xf32>
    %cst_139 = arith.constant dense<0xFF800000> : vector<8xf32>
    %372 = vector.multi_reduction <maximumf>, %371, %cst_139 [1] : vector<8x8xf32> to vector<8xf32>
    %373 = vector.shape_cast %372 : vector<8xf32> to vector<8x1xf32>
    %374 = vector.broadcast %373 : vector<8x1xf32> to vector<8x8xf32>
    %375 = arith.subf %371, %374 : vector<8x8xf32>
    %376 = math.exp %375 : vector<8x8xf32>
    %cst_140 = arith.constant dense<0.000000e+00> : vector<8xf32>
    %377 = vector.multi_reduction <add>, %376, %cst_140 [1] : vector<8x8xf32> to vector<8xf32>
    %378 = vector.shape_cast %377 : vector<8xf32> to vector<8x1xf32>
    %379 = tpu.reciprocal %378 {approx = true} : vector<8x1xf32> -> vector<8x1xf32>
    %380 = vector.broadcast %379 : vector<8x1xf32> to vector<8x8xf32>
    %381 = arith.mulf %376, %380 : vector<8x8xf32>
    %cst_141 = arith.constant dense<0.000000e+00> : vector<8x8xf32>
    %382 = tpu.matmul %381, %368, %cst_141 {dimension_numbers = #tpu.dot_dimension_numbers<[1], [0], [0], [1], [0, 0, 1, 1], [], []>} : vector<8x8xf32>, vector<8x8xf32>, vector<8x8xf32> -> vector<8x8xf32>
    %383 = vector.extract_strided_slice %229 {offsets = [16, 0], sizes = [8, 32], strides = [1, 1]} : vector<32x32xf32> to vector<8x32xf32>
    %cst_142 = arith.constant dense<0.000000e+00> : vector<8x32xf32>
    %384 = tpu.matmul %382, %383, %cst_142 {dimension_numbers = #tpu.dot_dimension_numbers<[1], [0], [0], [1], [0, 0, 1, 1], [], []>} : vector<8x8xf32>, vector<8x32xf32>, vector<8x32xf32> -> vector<8x32xf32>
    %385 = arith.addf %365, %384 : vector<8x32xf32>
    %386 = vector.extract_strided_slice %318 {offsets = [0, 24], sizes = [8, 8], strides = [1, 1]} : vector<8x32xf32> to vector<8x8xf32>
    %387 = vector.extract_strided_slice %319 {offsets = [0, 24], sizes = [8, 8], strides = [1, 1]} : vector<8x32xf32> to vector<8x8xf32>
    %388 = vector.extract_strided_slice %320 {offsets = [0, 24], sizes = [8, 8], strides = [1, 1]} : vector<8x32xf32> to vector<8x8xf32>
    %cst_143 = arith.constant dense<0.000000e+00> : vector<8x8xf32>
    %389 = tpu.matmul %386, %387, %cst_143 {dimension_numbers = #tpu.dot_dimension_numbers<[1], [1], [0], [0], [0, 0, 1, 0], [], []>} : vector<8x8xf32>, vector<8x8xf32>, vector<8x8xf32> -> vector<8x8xf32>
    %cst_144 = arith.constant -1.000000e+09 : f32
    %390 = vector.broadcast %cst_144 : f32 to vector<8x8xf32>
    %391 = arith.select %324, %390, %389 : vector<8x8xi1>, vector<8x8xf32>
    %cst_145 = arith.constant dense<0xFF800000> : vector<8xf32>
    %392 = vector.multi_reduction <maximumf>, %391, %cst_145 [1] : vector<8x8xf32> to vector<8xf32>
    %393 = vector.shape_cast %392 : vector<8xf32> to vector<8x1xf32>
    %394 = vector.broadcast %393 : vector<8x1xf32> to vector<8x8xf32>
    %395 = arith.subf %391, %394 : vector<8x8xf32>
    %396 = math.exp %395 : vector<8x8xf32>
    %cst_146 = arith.constant dense<0.000000e+00> : vector<8xf32>
    %397 = vector.multi_reduction <add>, %396, %cst_146 [1] : vector<8x8xf32> to vector<8xf32>
    %398 = vector.shape_cast %397 : vector<8xf32> to vector<8x1xf32>
    %399 = tpu.reciprocal %398 {approx = true} : vector<8x1xf32> -> vector<8x1xf32>
    %400 = vector.broadcast %399 : vector<8x1xf32> to vector<8x8xf32>
    %401 = arith.mulf %396, %400 : vector<8x8xf32>
    %cst_147 = arith.constant dense<0.000000e+00> : vector<8x8xf32>
    %402 = tpu.matmul %401, %388, %cst_147 {dimension_numbers = #tpu.dot_dimension_numbers<[1], [0], [0], [1], [0, 0, 1, 1], [], []>} : vector<8x8xf32>, vector<8x8xf32>, vector<8x8xf32> -> vector<8x8xf32>
    %403 = vector.extract_strided_slice %229 {offsets = [24, 0], sizes = [8, 32], strides = [1, 1]} : vector<32x32xf32> to vector<8x32xf32>
    %cst_148 = arith.constant dense<0.000000e+00> : vector<8x32xf32>
    %404 = tpu.matmul %402, %403, %cst_148 {dimension_numbers = #tpu.dot_dimension_numbers<[1], [0], [0], [1], [0, 0, 1, 1], [], []>} : vector<8x8xf32>, vector<8x32xf32>, vector<8x32xf32> -> vector<8x32xf32>
    %405 = arith.addf %385, %404 : vector<8x32xf32>
    %406 = tpu.concatenate %317, %405 in 0 : vector<8x32xf32>, vector<8x32xf32> -> vector<16x32xf32>
    %c0_149 = arith.constant 0 : index
    %c0_150 = arith.constant 0 : index
    %407 = vector.load %arg17[%c0_149, %c0_150] : memref<1x32xf32, #tpu.memory_space<vmem>>, vector<1x32xf32>
    %408 = vector.broadcast %407 : vector<1x32xf32> to vector<16x32xf32>
    %409 = arith.addf %406, %408 : vector<16x32xf32>
    %c0_151 = arith.constant 0 : index
    %c0_152 = arith.constant 0 : index
    %410 = vector.load %arg18[%c0_151, %c0_152] : memref<1x32xf32, #tpu.memory_space<vmem>>, vector<1x32xf32>
    %c0_153 = arith.constant 0 : index
    %c0_154 = arith.constant 0 : index
    %411 = vector.load %arg19[%c0_153, %c0_154] : memref<1x32xf32, #tpu.memory_space<vmem>>, vector<1x32xf32>
    %412 = arith.addf %409, %216 : vector<16x32xf32>
    %cst_155 = arith.constant dense<0.000000e+00> : vector<16xf32>
    %413 = vector.multi_reduction <add>, %412, %cst_155 [1] : vector<16x32xf32> to vector<16xf32>
    %414 = vector.shape_cast %413 : vector<16xf32> to vector<16x1xf32>
    %cst_156 = arith.constant 3.200000e+01 : f32
    %415 = vector.broadcast %cst_156 : f32 to vector<16x1xf32>
    %416 = arith.divf %414, %415 : vector<16x1xf32>
    %417 = vector.broadcast %416 : vector<16x1xf32> to vector<16x32xf32>
    %418 = arith.subf %412, %417 : vector<16x32xf32>
    %419 = arith.mulf %418, %418 : vector<16x32xf32>
    %cst_157 = arith.constant dense<0.000000e+00> : vector<16xf32>
    %420 = vector.multi_reduction <add>, %419, %cst_157 [1] : vector<16x32xf32> to vector<16xf32>
    %421 = vector.shape_cast %420 : vector<16xf32> to vector<16x1xf32>
    %cst_158 = arith.constant 3.200000e+01 : f32
    %422 = vector.broadcast %cst_158 : f32 to vector<16x1xf32>
    %423 = arith.divf %421, %422 : vector<16x1xf32>
    %cst_159 = arith.constant 9.99999974E-6 : f32
    %424 = vector.broadcast %cst_159 : f32 to vector<16x1xf32>
    %425 = arith.addf %423, %424 : vector<16x1xf32>
    %426 = math.rsqrt %425 : vector<16x1xf32>
    %427 = vector.broadcast %426 : vector<16x1xf32> to vector<16x32xf32>
    %428 = arith.mulf %418, %427 : vector<16x32xf32>
    %429 = vector.broadcast %410 : vector<1x32xf32> to vector<16x32xf32>
    %430 = arith.mulf %428, %429 : vector<16x32xf32>
    %431 = vector.broadcast %411 : vector<1x32xf32> to vector<16x32xf32>
    %432 = arith.addf %430, %431 : vector<16x32xf32>
    %433 = vector.broadcast %2 : vector<16x1xf32> to vector<16x32xf32>
    %434 = arith.mulf %432, %433 : vector<16x32xf32>
    %c0_160 = arith.constant 0 : index
    %c0_161 = arith.constant 0 : index
    %435 = vector.load %arg20[%c0_160, %c0_161] : memref<32x64xf32, #tpu.memory_space<vmem>>, vector<32x64xf32>
    %c0_162 = arith.constant 0 : index
    %c0_163 = arith.constant 0 : index
    %436 = vector.load %arg21[%c0_162, %c0_163] : memref<1x64xf32, #tpu.memory_space<vmem>>, vector<1x64xf32>
    %cst_164 = arith.constant dense<0.000000e+00> : vector<16x64xf32>
    %437 = tpu.matmul %434, %435, %cst_164 {dimension_numbers = #tpu.dot_dimension_numbers<[1], [0], [0], [1], [0, 0, 1, 1], [], []>} : vector<16x32xf32>, vector<32x64xf32>, vector<16x64xf32> -> vector<16x64xf32>
    %438 = vector.broadcast %436 : vector<1x64xf32> to vector<16x64xf32>
    %439 = arith.addf %437, %438 : vector<16x64xf32>
    %cst_165 = arith.constant 0.000000e+00 : f32
    %440 = vector.broadcast %cst_165 : f32 to vector<16x64xf32>
    %441 = arith.maximumf %439, %440 : vector<16x64xf32>
    %c0_166 = arith.constant 0 : index
    %c0_167 = arith.constant 0 : index
    %442 = vector.load %arg22[%c0_166, %c0_167] : memref<64x32xf32, #tpu.memory_space<vmem>>, vector<64x32xf32>
    %c0_168 = arith.constant 0 : index
    %c0_169 = arith.constant 0 : index
    %443 = vector.load %arg23[%c0_168, %c0_169] : memref<1x32xf32, #tpu.memory_space<vmem>>, vector<1x32xf32>
    %cst_170 = arith.constant dense<0.000000e+00> : vector<16x32xf32>
    %444 = tpu.matmul %441, %442, %cst_170 {dimension_numbers = #tpu.dot_dimension_numbers<[1], [0], [0], [1], [0, 0, 1, 1], [], []>} : vector<16x64xf32>, vector<64x32xf32>, vector<16x32xf32> -> vector<16x32xf32>
    %445 = vector.broadcast %443 : vector<1x32xf32> to vector<16x32xf32>
    %446 = arith.addf %444, %445 : vector<16x32xf32>
    %c0_171 = arith.constant 0 : index
    %c0_172 = arith.constant 0 : index
    %447 = vector.load %arg24[%c0_171, %c0_172] : memref<1x32xf32, #tpu.memory_space<vmem>>, vector<1x32xf32>
    %c0_173 = arith.constant 0 : index
    %c0_174 = arith.constant 0 : index
    %448 = vector.load %arg25[%c0_173, %c0_174] : memref<1x32xf32, #tpu.memory_space<vmem>>, vector<1x32xf32>
    %449 = arith.addf %446, %434 : vector<16x32xf32>
    %cst_175 = arith.constant dense<0.000000e+00> : vector<16xf32>
    %450 = vector.multi_reduction <add>, %449, %cst_175 [1] : vector<16x32xf32> to vector<16xf32>
    %451 = vector.shape_cast %450 : vector<16xf32> to vector<16x1xf32>
    %cst_176 = arith.constant 3.200000e+01 : f32
    %452 = vector.broadcast %cst_176 : f32 to vector<16x1xf32>
    %453 = arith.divf %451, %452 : vector<16x1xf32>
    %454 = vector.broadcast %453 : vector<16x1xf32> to vector<16x32xf32>
    %455 = arith.subf %449, %454 : vector<16x32xf32>
    %456 = arith.mulf %455, %455 : vector<16x32xf32>
    %cst_177 = arith.constant dense<0.000000e+00> : vector<16xf32>
    %457 = vector.multi_reduction <add>, %456, %cst_177 [1] : vector<16x32xf32> to vector<16xf32>
    %458 = vector.shape_cast %457 : vector<16xf32> to vector<16x1xf32>
    %cst_178 = arith.constant 3.200000e+01 : f32
    %459 = vector.broadcast %cst_178 : f32 to vector<16x1xf32>
    %460 = arith.divf %458, %459 : vector<16x1xf32>
    %cst_179 = arith.constant 9.99999974E-6 : f32
    %461 = vector.broadcast %cst_179 : f32 to vector<16x1xf32>
    %462 = arith.addf %460, %461 : vector<16x1xf32>
    %463 = math.rsqrt %462 : vector<16x1xf32>
    %464 = vector.broadcast %463 : vector<16x1xf32> to vector<16x32xf32>
    %465 = arith.mulf %455, %464 : vector<16x32xf32>
    %466 = vector.broadcast %447 : vector<1x32xf32> to vector<16x32xf32>
    %467 = arith.mulf %465, %466 : vector<16x32xf32>
    %468 = vector.broadcast %448 : vector<1x32xf32> to vector<16x32xf32>
    %469 = arith.addf %467, %468 : vector<16x32xf32>
    %470 = vector.broadcast %2 : vector<16x1xf32> to vector<16x32xf32>
    %471 = arith.mulf %469, %470 : vector<16x32xf32>
    %c0_180 = arith.constant 0 : index
    %c0_181 = arith.constant 0 : index
    %472 = vector.load %arg26[%c0_180, %c0_181] : memref<16x32xf32, #tpu.memory_space<vmem>>, vector<16x32xf32>
    tpu.vector_store %arg26[%c0_180, %c0_181], %471 {strides = array<i32>} : memref<16x32xf32, #tpu.memory_space<vmem>>, vector<16x32xf32>,
    return
  }
  func.func @transform_0(%arg0: i32) -> (i32, i32) {
    %c0_i32 = arith.constant 0 : i32
    %c0_i32_0 = arith.constant 0 : i32
    return %arg0, %c0_i32 : i32, i32
  }
  func.func @transform_1(%arg0: i32) -> (i32, i32) {
    %c0_i32 = arith.constant 0 : i32
    %c0_i32_0 = arith.constant 0 : i32
    return %arg0, %c0_i32 : i32, i32
  }
  func.func @transform_2(%arg0: i32) -> (i32, i32) {
    %c0_i32 = arith.constant 0 : i32
    %c0_i32_0 = arith.constant 0 : i32
    return %arg0, %c0_i32 : i32, i32
  }
  func.func @transform_3(%arg0: i32) -> (i32, i32, i32) {
    %c0_i32 = arith.constant 0 : i32
    %c0_i32_0 = arith.constant 0 : i32
    %c0_i32_1 = arith.constant 0 : i32
    return %arg0, %c0_i32, %c0_i32_0 : i32, i32, i32
  }
  func.func @transform_4(%arg0: i32) -> (i32, i32, i32) {
    %c0_i32 = arith.constant 0 : i32
    %c0_i32_0 = arith.constant 0 : i32
    %c0_i32_1 = arith.constant 0 : i32
    return %arg0, %c0_i32, %c0_i32_0 : i32, i32, i32
  }
  func.func @transform_5(%arg0: i32) -> (i32, i32) {
    %c0_i32 = arith.constant 0 : i32
    %c0_i32_0 = arith.constant 0 : i32
    %c0_i32_1 = arith.constant 0 : i32
    return %c0_i32, %c0_i32_0 : i32, i32
  }
  func.func @transform_6(%arg0: i32) -> (i32, i32) {
    %c0_i32 = arith.constant 0 : i32
    %c0_i32_0 = arith.constant 0 : i32
    %c0_i32_1 = arith.constant 0 : i32
    return %c0_i32, %c0_i32_0 : i32, i32
  }
  func.func @transform_7(%arg0: i32) -> (i32, i32) {
    %c0_i32 = arith.constant 0 : i32
    %c0_i32_0 = arith.constant 0 : i32
    %c0_i32_1 = arith.constant 0 : i32
    return %c0_i32, %c0_i32_0 : i32, i32
  }
  func.func @transform_8(%arg0: i32) -> (i32, i32) {
    %c0_i32 = arith.constant 0 : i32
    %c0_i32_0 = arith.constant 0 : i32
    %c0_i32_1 = arith.constant 0 : i32
    return %c0_i32, %c0_i32_0 : i32, i32
  }
  func.func @transform_9(%arg0: i32) -> (i32, i32) {
    %c0_i32 = arith.constant 0 : i32
    %c0_i32_0 = arith.constant 0 : i32
    %c0_i32_1 = arith.constant 0 : i32
    return %c0_i32, %c0_i32_0 : i32, i32
  }
  func.func @transform_10(%arg0: i32) -> (i32, i32) {
    %c0_i32 = arith.constant 0 : i32
    %c0_i32_0 = arith.constant 0 : i32
    %c0_i32_1 = arith.constant 0 : i32
    return %c0_i32, %c0_i32_0 : i32, i32
  }
  func.func @transform_11(%arg0: i32) -> (i32, i32) {
    %c0_i32 = arith.constant 0 : i32
    %c0_i32_0 = arith.constant 0 : i32
    %c0_i32_1 = arith.constant 0 : i32
    return %c0_i32, %c0_i32_0 : i32, i32
  }
  func.func @transform_12(%arg0: i32) -> (i32, i32) {
    %c0_i32 = arith.constant 0 : i32
    %c0_i32_0 = arith.constant 0 : i32
    %c0_i32_1 = arith.constant 0 : i32
    return %c0_i32, %c0_i32_0 : i32, i32
  }
  func.func @transform_13(%arg0: i32) -> (i32, i32) {
    %c0_i32 = arith.constant 0 : i32
    %c0_i32_0 = arith.constant 0 : i32
    %c0_i32_1 = arith.constant 0 : i32
    return %c0_i32, %c0_i32_0 : i32, i32
  }
  func.func @transform_14(%arg0: i32) -> (i32, i32) {
    %c0_i32 = arith.constant 0 : i32
    %c0_i32_0 = arith.constant 0 : i32
    %c0_i32_1 = arith.constant 0 : i32
    return %c0_i32, %c0_i32_0 : i32, i32
  }
  func.func @transform_15(%arg0: i32) -> (i32, i32) {
    %c0_i32 = arith.constant 0 : i32
    %c0_i32_0 = arith.constant 0 : i32
    %c0_i32_1 = arith.constant 0 : i32
    return %c0_i32, %c0_i32_0 : i32, i32
  }
  func.func @transform_16(%arg0: i32) -> (i32, i32) {
    %c0_i32 = arith.constant 0 : i32
    %c0_i32_0 = arith.constant 0 : i32
    %c0_i32_1 = arith.constant 0 : i32
    return %c0_i32, %c0_i32_0 : i32, i32
  }
  func.func @transform_17(%arg0: i32) -> (i32, i32) {
    %c0_i32 = arith.constant 0 : i32
    %c0_i32_0 = arith.constant 0 : i32
    %c0_i32_1 = arith.constant 0 : i32
    return %c0_i32, %c0_i32_0 : i32, i32
  }
  func.func @transform_18(%arg0: i32) -> (i32, i32) {
    %c0_i32 = arith.constant 0 : i32
    %c0_i32_0 = arith.constant 0 : i32
    %c0_i32_1 = arith.constant 0 : i32
    return %c0_i32, %c0_i32_0 : i32, i32
  }
  func.func @transform_19(%arg0: i32) -> (i32, i32) {
    %c0_i32 = arith.constant 0 : i32
    %c0_i32_0 = arith.constant 0 : i32
    %c0_i32_1 = arith.constant 0 : i32
    return %c0_i32, %c0_i32_0 : i32, i32
  }
  func.func @transform_20(%arg0: i32) -> (i32, i32) {
    %c0_i32 = arith.constant 0 : i32
    %c0_i32_0 = arith.constant 0 : i32
    %c0_i32_1 = arith.constant 0 : i32
    return %c0_i32, %c0_i32_0 : i32, i32
  }
  func.func @transform_21(%arg0: i32) -> (i32, i32) {
    %c0_i32 = arith.constant 0 : i32
    %c0_i32_0 = arith.constant 0 : i32
    %c0_i32_1 = arith.constant 0 : i32
    return %c0_i32, %c0_i32_0 : i32, i32
  }
  func.func @transform_22(%arg0: i32) -> (i32, i32) {
    %c0_i32 = arith.constant 0 : i32
    %c0_i32_0 = arith.constant 0 : i32
    %c0_i32_1 = arith.constant 0 : i32
    return %c0_i32, %c0_i32_0 : i32, i32
  }
  func.func @transform_23(%arg0: i32) -> (i32, i32) {
    %c0_i32 = arith.constant 0 : i32
    %c0_i32_0 = arith.constant 0 : i32
    %c0_i32_1 = arith.constant 0 : i32
    return %c0_i32, %c0_i32_0 : i32, i32
  }
  func.func @transform_24(%arg0: i32) -> (i32, i32) {
    %c0_i32 = arith.constant 0 : i32
    %c0_i32_0 = arith.constant 0 : i32
    %c0_i32_1 = arith.constant 0 : i32
    return %c0_i32, %c0_i32_0 : i32, i32
  }
  func.func @transform_25(%arg0: i32) -> (i32, i32) {
    %c0_i32 = arith.constant 0 : i32
    %c0_i32_0 = arith.constant 0 : i32
    return %arg0, %c0_i32 : i32, i32
  }
}

</mosaic_0001>

<bundles_post_ra>
// kernel: decoder_transformer_layer.1
= control target key start
LH: loop header
LB: loop body
LE: loop exit
PB: predicated region body
PF: predicated region fallthrough
CT: control target
= control target key end

     0   :  { %s3435_s0 = inlined_call_operand.hbm [shape: f32[16,32], index: 0, kind: input, shape index: {}]   ;;  %s3436_s1 = inlined_call_operand.hbm [shape: f32[16,32], index: 1, kind: input, shape index: {}]   ;;  %s3437_s2 = inlined_call_operand.vmem [shape: f32[16,1], index: 2, kind: input, shape index: {}]   ;;  %s3438_s3 = inlined_call_operand.hbm [shape: f32[2,8,8], index: 3, kind: input, shape index: {}]   ;;  %s3439_s4 = inlined_call_operand.hbm [shape: f32[2,8,8], index: 4, kind: input, shape index: {}]   ;;  %s3440_s5 = inlined_call_operand.vmem [shape: f32[32,96], index: 5, kind: input, shape index: {}]   ;;  %s3441_s6 = inlined_call_operand.vmem [shape: f32[1,96], index: 6, kind: input, shape index: {}]   ;;  %s3442_s7 = inlined_call_operand.vmem [shape: f32[32,32], index: 7, kind: input, shape index: {}]   ;;  %s3443_s8 = inlined_call_operand.vmem [shape: f32[1,32], index: 8, kind: input, shape index: {}]   ;;  %s3444_s9 = inlined_call_operand.vmem [shape: f32[1,32], index: 9, kind: input, shape index: {}]   ;;  %s3445_s10 = inlined_call_operand.vmem [shape: f32[1,32], index: 10, kind: input, shape index: {}]   ;;  %s3446_s11 = inlined_call_operand.vmem [shape: f32[32,32], index: 11, kind: input, shape index: {}]   ;;  %s3447_s12 = inlined_call_operand.vmem [shape: f32[1,32], index: 12, kind: input, shape index: {}]   ;;  %s3448_s13 = inlined_call_operand.hbm [shape: f32[32,64], index: 13, kind: input, shape index: {}]   ;;  %s3449_s14 = inlined_call_operand.vmem [shape: f32[1,64], index: 14, kind: input, shape index: {}]   ;;  %s3450_s15 = inlined_call_operand.hbm [shape: f32[32,32], index: 15, kind: input, shape index: {}]   ;;  %s3451_s16 = inlined_call_operand.hbm [shape: f32[1,32], index: 16, kind: input, shape index: {}]   ;;  %s3452_s17 = inlined_call_operand.hbm [shape: f32[1,32], index: 17, kind: input, shape index: {}]   ;;  %s3453_s18 = inlined_call_operand.hbm [shape: f32[1,32], index: 18, kind: input, shape index: {}]   ;;  %s3454_s19 = inlined_call_operand.hbm [shape: f32[32,64], index: 19, kind: input, shape index: {}]   ;;  %s3455_s20 = inlined_call_operand.hbm [shape: f32[1,64], index: 20, kind: input, shape index: {}]   ;;  %s3456_s21 = inlined_call_operand.vmem [shape: f32[64,32], index: 21, kind: input, shape index: {}]   ;;  %s3457_s22 = inlined_call_operand.hbm [shape: f32[1,32], index: 22, kind: input, shape index: {}]   ;;  %s3458_s23 = inlined_call_operand.hbm [shape: f32[1,32], index: 23, kind: input, shape index: {}]   ;;  %s3459_s24 = inlined_call_operand.hbm [shape: f32[1,32], index: 24, kind: input, shape index: {}]   ;;  %s3460_s25 = inlined_call_operand.hbm [shape: f32[16,32], index: 25, kind: output, shape index: {}]  }
   0x1   :  { %3464 = sst [smem:[#allocation35_spill]] %s3435_s0 }
   0x2   :  { %3465 = sst [smem:[#allocation36_spill]] %s3436_s1 }
   0x3   :  { %3466 = sst [smem:[#allocation37_spill]] %s3437_s2 }
   0x4   :  { %3467 = sst [smem:[#allocation38_spill]] %s3438_s3 }
   0x5   :  { %3468 = sst [smem:[#allocation39_spill]] %s3439_s4 }
   0x6   :  { %3469 = sst [smem:[#allocation40_spill]] %s3440_s5 }
   0x7   :  { %3470 = sst [smem:[#allocation41_spill]] %s3441_s6 }
   0x8   :  { %3471 = sst [smem:[#allocation42_spill]] %s3442_s7 }
   0x9   :  { %3472 = sst [smem:[#allocation43_spill]] %s3443_s8 }
   0xa   :  { %3473 = sst [smem:[#allocation44_spill]] %s3444_s9 }
   0xb   :  { %30 = vsyncpa [#allocation3], 0 }
   0xc   :  { %31 = vsyncpa [#allocation6], 0 }
   0xd   :  { %32 = vsyncpa [#allocation9], 0 }
   0xe   :  { %33 = vsyncpa [#allocation12], 0 }
   0xf   :  { %34 = vsyncpa [#allocation15], 0 }
  0x10   :  { %35 = vsyncpa [#allocation18], 0 }
  0x11   :  { %36 = vsyncpa [#allocation21], 0 }
  0x12   :  { %37 = vsyncpa [#allocation24], 0 }
  0x13   :  { %38 = vsyncpa [#allocation4], 0  ;;  %s3474_s6 = sld [smem:[#allocation36_spill]]  ;;  %s2745_s7 = smov [#allocation5]  }
  0x14   :  { %s58_s3 = sshll.u32 %s2745_s7, 4  ;;  %s3475_s8 = sld [smem:[#allocation39_spill]]  ;;  %s59_s3 = int_to_ptr.vmem [resolvable:$true] %s58_s3 }
  0x15   :  { %s2746_s4 = smov 128   ;;  %s2747_s28 = smov 8  }
  0x16   :  { %s2748_s9 = smov [#allocation8]   ;;  %s128_s2 = sshll.u32 %s3450_s15, 4  ;;  %s129_s2 = int_to_ptr.hbm [resolvable:$true] %s128_s2 }
  0x17   :  { %s86_s5 = sshll.u32 %s2748_s9, 4  ;;  %s153_s26 = sshll.u32 %s3452_s17, 4  ;;  %s87_s5 = int_to_ptr.vmem [resolvable:$true] %s86_s5  ;;  %s154_s26 = int_to_ptr.hbm [resolvable:$true] %s153_s26 }
  0x18   :  { %s2749_s1 = smov [#allocation11]   ;;  %s174_s0 = sshll.u32 %s3454_s19, 4  ;;  %s175_s0 = int_to_ptr.hbm [resolvable:$true] %s174_s0 }
  0x19   :  { %s56_s30 = sshll.u32 %s3474_s6, 4  ;;  %s201_s17 = sshll.u32 %s3457_s22, 4  ;;  %s57_s30 = int_to_ptr.hbm [resolvable:$true] %s56_s30  ;;  %s202_s17 = int_to_ptr.hbm [resolvable:$true] %s201_s17 }
  0x1a   :  { %s84_s27 = sshll.u32 %s3475_s8, 4  ;;  %s130_s8 = sshll.u32 %s2749_s1, 4  ;;  %s85_s27 = int_to_ptr.hbm [resolvable:$true] %s84_s27  ;;  %s131_s8 = int_to_ptr.vmem [resolvable:$true] %s130_s8 }
  0x1b   :  { %64 = dma.hbm_to_vmem [thread:$0]  %s57_s30, 256, %s59_s3, [#allocation6], %s2746_s4, %s2746_s4, %s2747_s28  }
  0x1c   :  { %92 = dma.hbm_to_vmem [thread:$0]  %s85_s27, 256, %s87_s5, [#allocation9], %s2746_s4, %s2746_s4, %s2747_s28  }
  0x1d   :  { %136 = dma.hbm_to_vmem [thread:$0]  %s129_s2, 512, %s131_s8, [#allocation12], %s2746_s4, %s2746_s4, %s2747_s28  }
  0x1e   :  { %s2750_s30 = smov [#allocation14]   ;;  %s2751_s29 = smov [#allocation17]  }
  0x1f   :  { %s155_s15 = sshll.u32 %s2750_s30, 4  ;;  %s176_s6 = sshll.u32 %s2751_s29, 4  ;;  %s156_s15 = int_to_ptr.vmem [resolvable:$true] %s155_s15  ;;  %s177_s6 = int_to_ptr.vmem [resolvable:$true] %s176_s6 }
  0x20   :  { %158 = dma.hbm_to_vmem [thread:$0]  %s154_s26, 16, %s156_s15, [#allocation15]  }
  0x21   :  { %182 = dma.hbm_to_vmem [thread:$0]  %s175_s0, 512, %s177_s6, [#allocation18], %s2746_s4, %s2746_s4, %s2747_s28  }
  0x22   :  { %s2752_s2 = smov [#allocation20]   ;;  %s3476_s19 = sld [smem:[#allocation35_spill]] }
  0x23   :  { %s203_s7 = sshll.u32 %s2752_s2, 4  ;;  %s3477_s22 = sld [smem:[#allocation38_spill]]  ;;  %s204_s7 = int_to_ptr.vmem [resolvable:$true] %s203_s7 }
  0x24   :  { %206 = dma.hbm_to_vmem [thread:$0]  %s202_s17, 16, %s204_s7, [#allocation21]  }
  0x25   :  { %s2753_s9 = smov [#allocation2]   ;;  %s2754_s0 = smov [#allocation7]  }
  0x26   :  { %s45_s27 = sshll.u32 %s2753_s9, 4  ;;  %s73_s5 = sshll.u32 %s2754_s0, 4  ;;  %s46_s27 = int_to_ptr.vmem [resolvable:$true] %s45_s27  ;;  %s74_s5 = int_to_ptr.vmem [resolvable:$true] %s73_s5 }
  0x27   :  { %s113_s2 = sshll.u32 %s3448_s13, 4  ;;  %s142_s1 = sshll.u32 %s3451_s16, 4  ;;  %s114_s2 = int_to_ptr.hbm [resolvable:$true] %s113_s2  ;;  %s143_s1 = int_to_ptr.hbm [resolvable:$true] %s142_s1 }
  0x28   :  { %s43_s30 = sshll.u32 %s3476_s19, 4  ;;  %s2755_s8 = smov [#allocation10]   ;;  %s44_s30 = int_to_ptr.hbm [resolvable:$true] %s43_s30 }
  0x29   :  { %s71_s3 = sshll.u32 %s3477_s22, 4  ;;  %s115_s19 = sshll.u32 %s2755_s8, 4  ;;  %s72_s3 = int_to_ptr.hbm [resolvable:$true] %s71_s3  ;;  %s116_s19 = int_to_ptr.vmem [resolvable:$true] %s115_s19 }
  0x2a   :  { %51 = dma.hbm_to_vmem [thread:$0]  %s44_s30, 256, %s46_s27, [#allocation3], %s2746_s4, %s2746_s4, %s2747_s28  }
  0x2b   :  { %79 = dma.hbm_to_vmem [thread:$0]  %s72_s3, 256, %s74_s5, [#allocation6], %s2746_s4, %s2746_s4, %s2747_s28  }
  0x2c   :  { %121 = dma.hbm_to_vmem [thread:$0]  %s114_s2, 512, %s116_s19, [#allocation9], %s2746_s4, %s2746_s4, %s2747_s28  }
  0x2d   :  { %s2756_s30 = smov [#allocation13]   ;;  %s164_s22 = sshll.u32 %s3453_s18, 4  ;;  %s165_s22 = int_to_ptr.hbm [resolvable:$true] %s164_s22 }
  0x2e   :  { %s144_s13 = sshll.u32 %s2756_s30, 4  ;;  %s188_s16 = sshll.u32 %s3455_s20, 4  ;;  %s145_s13 = int_to_ptr.vmem [resolvable:$true] %s144_s13  ;;  %s189_s16 = int_to_ptr.hbm [resolvable:$true] %s188_s16 }
  0x2f   :  { %147 = dma.hbm_to_vmem [thread:$0]  %s143_s1, 16, %s145_s13, [#allocation12]  }
  0x30   :  { %s2757_s27 = smov [#allocation16]   ;;  %s2758_s5 = smov [#allocation19]  }
  0x31   :  { %s166_s0 = sshll.u32 %s2757_s27, 4  ;;  %s190_s29 = sshll.u32 %s2758_s5, 4  ;;  %s167_s0 = int_to_ptr.vmem [resolvable:$true] %s166_s0  ;;  %s191_s29 = int_to_ptr.vmem [resolvable:$true] %s190_s29 }
  0x32   :  { %169 = dma.hbm_to_vmem [thread:$0]  %s165_s22, 16, %s167_s0, [#allocation15]  }
  0x33   :  { %s212_s17 = sshll.u32 %s3458_s23, 4  ;;  %s223_s1 = sshll.u32 %s3459_s24, 4  ;;  %s213_s17 = int_to_ptr.hbm [resolvable:$true] %s212_s17  ;;  %s224_s1 = int_to_ptr.hbm [resolvable:$true] %s223_s1 }
  0x34   :  { %193 = dma.hbm_to_vmem [thread:$0]  %s189_s16, 16, %s191_s29, [#allocation18]  }
  0x35   :  { %s2759_s8 = smov [#allocation22]   ;;  %s2760_s19 = smov [#allocation23]  }
  0x36   :  { %s214_s20 = sshll.u32 %s2759_s8, 4  ;;  %s225_s30 = sshll.u32 %s2760_s19, 4  ;;  %s215_s20 = int_to_ptr.vmem [resolvable:$true] %s214_s20  ;;  %s226_s30 = int_to_ptr.vmem [resolvable:$true] %s225_s30 }
  0x37   :  { %217 = dma.hbm_to_vmem [thread:$0]  %s213_s17, 16, %s215_s20, [#allocation21]  }
  0x38   :  { %228 = dma.hbm_to_vmem [thread:$0]  %s224_s1, 16, %s226_s30, [#allocation24]  }
  0x39   :  { %2727 = dma.done.wait [#allocation3], 256  }
  0x3a   :  { %2728 = vsyncadd [#allocation3], 4294967040 }
  0x3b   :  { %2729 = dma.done.wait [#allocation6], 512  }
  0x3c   :  { %2730 = vsyncadd [#allocation6], 4294966784 }
  0x3d   :  { %2731 = dma.done.wait [#allocation9], 768  }
  0x3e   :  { %2732 = vsyncadd [#allocation9], 4294966528 }
  0x3f   :  { %2733 = dma.done.wait [#allocation12], 528  }
  0x40   :  { %2734 = vsyncadd [#allocation12], 4294966768 }
  0x41   :  { %2735 = dma.done.wait [#allocation15], 32  }
  0x42   :  { %2736 = vsyncadd [#allocation15], 4294967264 }
  0x43   :  { %2737 = dma.done.wait [#allocation18], 528  }
  0x44   :  { %2738 = vsyncadd [#allocation18], 4294966768 }
  0x45   :  { %2739 = dma.done.wait [#allocation21], 32  }
  0x46   :  { %2740 = vsyncadd [#allocation21], 4294967264 }
  0x47   :  { %2741 = dma.done.wait [#allocation24], 16  }
  0x48   :  { %2742 = vsyncadd [#allocation24], 4294967280  ;;  %s3478_s13 = sld [smem:[#allocation40_spill]]  ;;  %vm299_vm0 = vcmask 261120   ;;  %v2980_v4 = vld [vmem:[#allocation2] sm:$0xff]  ;;  %s2761_s29 = smov 120  }
  0x49   :  { %s3479_s5 = sld [smem:[#allocation41_spill]]  ;;  %s2762_s6 = smov 96   ;;  %vm338_vm1 = vcmask 64512   ;;  %v3003_v11 = vld [vmem:[#allocation7] sm:$0xff]  ;;  %v3026_v28 = vld [vmem:[#allocation2 + $0x8] sm:$0xff] }
  0x4a   :  { %s2763_s2 = smov 88   ;;  %vm334_vm2 = vcmp.gt.f32.partialorder %v3003_v11, 0.0  ;;  %s2764_s17 = smov 112  }
  0x4b   :  { %s2765_s18 = smov 72   ;;  %s2766_s7 = smov 104  }
  0x4c   :  { %s2767_s1 = smov 64   ;;  %s2768_s8 = smov 56  }
  0x4d   :  { %s2769_s20 = smov 80   ;;  %s3480_s23 = sld [smem:[#allocation42_spill]] }
  0x4e   :  { %v294_v0 = vld [vmem:[%s3478_s13 + $0x18] sm:$0xff]  ;;  %v293_v1 = vld [vmem:[%s3478_s13 + $0x10] sm:$0xff]  ;;  %v292_v2 = vld [vmem:[%s3478_s13 + $0x8] sm:$0xff]  ;;  %s2770_s26 = smov 40   ;;  %s2771_s15 = smov 48  }
  0x4f   :  { %318 = vmatpush.msra.mxu0 %v294_v0  ;;  %2240 = vmatpush.msra.mxu2 %v294_v0  ;;  %v291_v3 = vld [vmem:[%s3478_s13] sm:$0xff]  ;;  %s3482_s19 = sld [smem:[#allocation37_spill]]  ;;  %s2146_s27 = sshll.u32 %s3460_s25, 4  ;;  %s2147_s27 = int_to_ptr.hbm [resolvable:$true] %s2146_s27 }
  0x50   :  { %v2987_v5 = vld [vmem:[%s3479_s5] ss:$0 sm:$0xff]  ;;  %s3481_s5 = sld [smem:[#allocation43_spill]] }
  0x51   :  { %319 = vmatpush.msra.mxu0 %v293_v1  ;;  %2241 = vmatpush.msra.mxu2 %v293_v1  ;;  %s3483_s16 = sld [smem:[#allocation44_spill]] }
  0x53   :  { %320 = vmatpush.msra.mxu0 %v292_v2  ;;  %2242 = vmatpush.msra.mxu2 %v292_v2  ;;  %v3037_v39 = vld [vmem:[%s3480_s23] sm:$0xff]  ;;  %v330_v40 = vld [vmem:[%s3480_s23 + $0x8] sm:$0xff]  ;;  %v331_v55 = vld [vmem:[%s3480_s23 + $0x10] sm:$0xff] }
  0x55   :  { %321 = vmatpush.msra.mxu0 %v291_v3  ;;  %2243 = vmatpush.msra.mxu2 %v291_v3 }
  0x56   :  { %2166 = vmatmul.msk.f32.vlgmr.msra.gmra.mxu0 %vm299_vm0, %v2980_v4  ;;  %2167 = vmatmul.msk.f32.vlgmr.msra.gmra.mxu2 %vm299_vm0, %v3026_v28 }
  0xd3   :  { %v323_v6 = vpop.f32.mrf.mxu0 }
  0xd4   :  { %v2990_v7 = vadd.f32 %v2987_v5, %v323_v6 }
  0xd6   :  { %401 = vrot.lane.b32.xlu1 %v2990_v7, %s2761_s29  ;;  %336 = vrot.lane.b32.xlu0 %v2990_v7, %s2762_s6 }
  0xd9   :  { %v326_v41 = vpop.f32.mrf.mxu2 }
  0xda   :  { %v3051_v47 = vadd.f32 %v2987_v5, %v326_v41 }
  0xde   :  { %403 = vrot.lane.b32.xlu0 %v2990_v7, %s2763_s2 }
 0x148   :  { %v337_v8 = vpop.permute.xlu0 %336  ;;  %v402_v10 = vpop.permute.xlu1 %401 }
 0x149   :  { %2168 = vmatpush.xpose.msk.msra.mxu1 %vm338_vm1, %v337_v8 }
 0x14c   :  { %2169 = vmatmul.msk.f32.vlgmr.msra.gmra.mxu1 %vm338_vm1, %v2990_v7 }
 0x14d   :  { %485 = vmatpush.msrb.mxu1 %v330_v40 }
 0x150   :  { %v404_v9 = vpop.permute.xlu0 %403 }
 0x151   :  { %2171 = vmatpush.xpose.msk.msra.mxu3 %vm338_vm1, %v404_v9 }
 0x154   :  { %2172 = vmatmul.msk.f32.vlgmr.msra.gmra.mxu3 %vm338_vm1, %v402_v10  ;;  %v3082_v10 = vld [vmem:[#allocation7 + $0x8] sm:$0xff] }
 0x155   :  { %508 = vmatpush.msrb.mxu3 %v3037_v39  ;;  %vm695_vm3 = vcmp.gt.f32.partialorder %v3082_v10, 0.0 }
 0x157   :  { %597 = vmatpush.msra.mxu3 %v331_v55 }
 0x1c9   :  { %v360_v12 = vpop.f32.mrf.mxu1 }
 0x1ca   :  { %v363_v13 = vsel %vm334_vm2, -1e+09, %v360_v12 }
 0x1cb   :  { %v364_v14 = vsel %vm338_vm1, %v363_v13, -inf }
 0x1cc   :  { %365 = vmax.xlane.f32.xlu1 %v364_v14 }
 0x1d7   :  { %v426_v15 = vpop.f32.mrf.mxu3 }
 0x1d8   :  { %v429_v16 = vsel %vm334_vm2, -1e+09, %v426_v15 }
 0x1d9   :  { %v430_v17 = vsel %vm338_vm1, %v429_v16, -inf }
 0x1da   :  { %431 = vmax.xlane.f32.xlu2 %v430_v17 }
 0x1e5   :  { %513 = vrot.lane.b32.xlu1 %v2990_v7, %s2764_s17 }
 0x1ed   :  { %605 = vrot.lane.b32.xlu1 %v2990_v7, %s2765_s18 }
 0x1f5   :  { %603 = vrot.lane.b32.xlu1 %v2990_v7, %s2766_s7 }
 0x23f   :  { %v366_v18 = vpop.xlane.xlu1 %365 }
 0x240   :  { %v367_v19 = vsub.f32 %v363_v13, %v366_v18 }
 0x242   :  { %v368_v20 = vmul.f32 1.442695, %v367_v19 }
 0x244   :  { %2289 = vpow2.f32 %v368_v20 }
 0x24a   :  { %v2290_v21 = vpop.eup %2289 }
 0x24b   :  { %v370_v22 = vsel %vm338_vm1, %v2290_v21, 0.0 }
 0x24c   :  { %371 = vadd.xlane.f32.xlu2 %v370_v22 }
 0x24d   :  { %v432_v23 = vpop.xlane.xlu2 %431 }
 0x24e   :  { %v433_v24 = vsub.f32 %v429_v16, %v432_v23 }
 0x250   :  { %v434_v25 = vmul.f32 1.442695, %v433_v24 }
 0x252   :  { %2291 = vpow2.f32 %v434_v25 }
 0x257   :  { %v514_v38 = vpop.permute.xlu1 %513 }
 0x258   :  { %v2292_v26 = vpop.eup %2291 }
 0x259   :  { %v436_v27 = vsel %vm338_vm1, %v2292_v26, 0.0 }
 0x25a   :  { %437 = vadd.xlane.f32.xlu0 %v436_v27 }
 0x25f   :  { %v606_v58 = vpop.permute.xlu1 %605 }
 0x264   :  { %375 = vrot.lane.b32.xlu2 %v2990_v7, %s2767_s1 }
 0x267   :  { %v604_v62 = vpop.permute.xlu1 %603 }
 0x26c   :  { %441 = vrot.lane.b32.xlu2 %v2990_v7, %s2768_s8 }
 0x274   :  { %515 = vrot.lane.b32.xlu2 %v2990_v7, %s2769_s20 }
 0x2bf   :  { %v372_v29 = vpop.xlane.xlu2 %371 }
 0x2c0   :  { %2293 = vrcp.f32 %v372_v29  ;;  %v3110_v29 = vld [vmem:[%s3480_s23 + $0x18] sm:$0xff] }
 0x2c6   :  { %v2294_v30 = vpop.eup %2293 }
 0x2c7   :  { %v376_v31 = vpop.permute.xlu2 %375  ;;  %v374_v32 = vmul.f32 %v2294_v30, %v2290_v21 }
 0x2c8   :  { %396 = vmatpush.msrb.mxu2 %v376_v31 }
 0x2c9   :  { %2170 = vmatmul.msk.f32.vlgmr.msrb.gmra.mxu2 %vm338_vm1, %v374_v32 }
 0x2cd   :  { %v438_v33 = vpop.xlane.xlu0 %437 }
 0x2ce   :  { %2295 = vrcp.f32 %v438_v33 }
 0x2cf   :  { %v442_v34 = vpop.permute.xlu2 %441 }
 0x2d0   :  { %462 = vmatpush.msra.mxu2 %v442_v34 }
 0x2d4   :  { %v2296_v35 = vpop.eup %2295 }
 0x2d5   :  { %v440_v36 = vmul.f32 %v2296_v35, %v2292_v26 }
 0x2d7   :  { %2173 = vmatmul.msk.f32.vlgmr.msra.gmra.mxu2 %vm338_vm1, %v440_v36  ;;  %v516_v37 = vpop.permute.xlu2 %515 }
 0x2d8   :  { %2176 = vmatpush.xpose.msk.msrb.mxu2 %vm338_vm1, %v516_v37 }
 0x2df   :  { %2177 = vmatmul.msk.f32.vlgmr.msrb.gmra.mxu2 %vm338_vm1, %v514_v38 }
 0x34c   :  { %v398_v42 = vpop.f32.mrf.mxu2 }
 0x34d   :  { %2175 = vmatmul.msk.f32.vlgmr.msrb.gmra.mxu3 %vm338_vm1, %v398_v42 }
 0x35a   :  { %v464_v43 = vpop.f32.mrf.mxu2 }
 0x35b   :  { %2174 = vmatmul.msk.f32.vlgmr.msrb.gmra.mxu1 %vm338_vm1, %v464_v43 }
 0x362   :  { %v538_v44 = vpop.f32.mrf.mxu2 }
 0x363   :  { %v541_v45 = vsel %vm334_vm2, -1e+09, %v538_v44 }
 0x364   :  { %v542_v46 = vsel %vm338_vm1, %v541_v45, -inf }
 0x365   :  { %543 = vmax.xlane.f32.xlu2 %v542_v46 }
 0x37d   :  { %643 = vrot.lane.b32.xlu2 %v2990_v7, %s2770_s26 }
 0x385   :  { %763 = vrot.lane.b32.xlu2 %v3051_v47, %s2763_s2 }
 0x3d0   :  { %v3078_v5 = vpop.f32.mrf.mxu3 }
 0x3d8   :  { %v544_v48 = vpop.xlane.xlu2 %543  ;;  %v3068_v63 = vpop.f32.mrf.mxu1 }
 0x3d9   :  { %v545_v49 = vsub.f32 %v541_v45, %v544_v48 }
 0x3db   :  { %v546_v50 = vmul.f32 1.442695, %v545_v49 }
 0x3dd   :  { %2297 = vpow2.f32 %v546_v50 }
 0x3e0   :  { %v644_v51 = vpop.permute.xlu2 %643 }
 0x3e1   :  { %664 = vmatpush.msra.mxu2 %v644_v51 }
 0x3e3   :  { %v2298_v52 = vpop.eup %2297 }
 0x3e4   :  { %v548_v53 = vsel %vm338_vm1, %v2298_v52, 0.0 }
 0x3e5   :  { %549 = vadd.xlane.f32.xlu0 %v548_v53 }
 0x3e8   :  { %v764_v54 = vpop.permute.xlu2 %763 }
 0x3e9   :  { %2187 = vmatpush.xpose.msk.msrb.mxu2 %vm338_vm1, %v764_v54 }
 0x3f9   :  { %553 = vrot.lane.b32.xlu0 %v2990_v7, %s2771_s15 }
 0x401   :  { %697 = vrot.lane.b32.xlu0 %v3051_v47, %s2762_s6 }
 0x458   :  { %v550_v56 = vpop.xlane.xlu0 %549 }
 0x459   :  { %2299 = vrcp.f32 %v550_v56 }
 0x45f   :  { %v2300_v57 = vpop.eup %2299 }
 0x460   :  { %v552_v59 = vmul.f32 %v2300_v57, %v2298_v52  ;;  %v511_v52 = vadd.f32 %v3078_v5, %v3068_v63  ;;  %v3133_v57 = vld [vmem:[%s3481_s5] ss:$0 sm:$0xff] }
 0x46b   :  { %v554_v60 = vpop.permute.xlu0 %553 }
 0x46c   :  { %574 = vmatpush.msra.mxu1 %v554_v60 }
 0x46d   :  { %2178 = vmatmul.msk.f32.vlgmr.msra.gmra.mxu1 %vm338_vm1, %v552_v59 }
 0x46e   :  { %2180 = vmatpush.xpose.msk.msrb.mxu1 %vm338_vm1, %v606_v58 }
 0x472   :  { %687 = vmatpush.msra.mxu1 %v3110_v29 }
 0x473   :  { %v698_v61 = vpop.permute.xlu0 %697 }
 0x474   :  { %2184 = vmatpush.xpose.msk.msrb.mxu3 %vm338_vm1, %v698_v61 }
 0x475   :  { %2181 = vmatmul.msk.f32.vlgmr.msrb.gmra.mxu1 %vm338_vm1, %v604_v62 }
 0x4ea   :  { %v576_v0 = vpop.f32.mrf.mxu1 }
 0x4eb   :  { %2179 = vmatmul.msk.f32.vlgmr.msra.gmra.mxu3 %vm338_vm1, %v576_v0  ;;  %v2772_v0 = vmov 32.0  }
 0x4ec   :  { %845 = vmatpush.msra.mxu3 %v330_v40 }
 0x4f2   :  { %v628_v1 = vpop.f32.mrf.mxu1 }
 0x4f3   :  { %v631_v2 = vsel %vm334_vm2, -1e+09, %v628_v1  ;;  %2185 = vmatmul.msk.f32.vlgmr.msrb.gmra.mxu3 %vm338_vm1, %v3051_v47  ;;  %v2773_v1 = vmov 0  }
 0x4f4   :  { %v632_v3 = vsel %vm338_vm1, %v631_v2, -inf  ;;  %957 = vmatpush.msrb.mxu3 %v331_v55  ;;  %2274 = vset.pattern.permute.xlu1 %v2773_v1 }
 0x4f5   :  { %633 = vmax.xlane.f32.xlu1 %v632_v3  ;;  %2275 = vset.pattern.permute.xlu0 %v2773_v1 }
 0x50e   :  { %761 = vrot.lane.b32.xlu1 %v3051_v47, %s2761_s29 }
 0x568   :  { %v634_v6 = vpop.xlane.xlu1 %633 }
 0x569   :  { %v635_v7 = vsub.f32 %v631_v2, %v634_v6 }
 0x56b   :  { %v636_v8 = vmul.f32 1.442695, %v635_v7 }
 0x56d   :  { %2301 = vpow2.f32 %v636_v8 }
 0x56e   :  { %v3080_v9 = vpop.f32.mrf.mxu3 }
 0x56f   :  { %v602_v55 = vadd.f32 %v3080_v9, %v511_v52  ;;  %v3178_v52 = vld [vmem:[%s3483_s16] ss:$0 sm:$0xff] }
 0x573   :  { %v2302_v11 = vpop.eup %2301 }
 0x574   :  { %v638_v12 = vsel %vm338_vm1, %v2302_v11, 0.0 }
 0x575   :  { %639 = vadd.xlane.f32.xlu0 %v638_v12 }
 0x576   :  { %v720_v13 = vpop.f32.mrf.mxu3 }
 0x577   :  { %v723_v14 = vsel %vm695_vm3, -1e+09, %v720_v13 }
 0x578   :  { %v724_v15 = vsel %vm338_vm1, %v723_v14, -inf }
 0x579   :  { %725 = vmax.xlane.f32.xlu2 %v724_v15 }
 0x580   :  { %v762_v24 = vpop.permute.xlu1 %761 }
 0x589   :  { %875 = vrot.lane.b32.xlu0 %v3051_v47, %s2769_s20 }
 0x591   :  { %735 = vrot.lane.b32.xlu0 %v3051_v47, %s2767_s1  ;;  %873 = vrot.lane.b32.xlu2 %v3051_v47, %s2764_s17 }
 0x599   :  { %965 = vrot.lane.b32.xlu0 %v3051_v47, %s2765_s18 }
 0x5e8   :  { %v640_v16 = vpop.xlane.xlu0 %639 }
 0x5e9   :  { %2303 = vrcp.f32 %v640_v16 }
 0x5ec   :  { %v726_v17 = vpop.xlane.xlu2 %725 }
 0x5ed   :  { %v727_v18 = vsub.f32 %v723_v14, %v726_v17 }
 0x5ef   :  { %v2304_v19 = vpop.eup %2303  ;;  %v728_v20 = vmul.f32 1.442695, %v727_v18 }
 0x5f0   :  { %v642_v21 = vmul.f32 %v2304_v19, %v2302_v11 }
 0x5f1   :  { %2305 = vpow2.f32 %v728_v20 }
 0x5f2   :  { %2182 = vmatmul.msk.f32.vlgmr.msra.gmra.mxu2 %vm338_vm1, %v642_v21 }
 0x5f4   :  { %v874_v26 = vpop.permute.xlu2 %873 }
 0x5f7   :  { %v2306_v22 = vpop.eup %2305 }
 0x5f8   :  { %v730_v23 = vsel %vm338_vm1, %v2306_v22, 0.0 }
 0x5f9   :  { %731 = vadd.xlane.f32.xlu2 %v730_v23  ;;  %v289_v23 = vld [vmem:[%s3482_s19] sm:$0xff] }
 0x5fa   :  { %2188 = vmatmul.msk.f32.vlgmr.msrb.gmra.mxu2 %vm338_vm1, %v762_v24 }
 0x5fb   :  { %v876_v25 = vpop.permute.xlu0 %875 }
 0x5fc   :  { %2192 = vmatpush.xpose.msk.msra.mxu2 %vm338_vm1, %v876_v25 }
 0x602   :  { %2193 = vmatmul.msk.f32.vlgmr.msra.gmra.mxu2 %vm338_vm1, %v874_v26 }
 0x603   :  { %v736_v27 = vpop.permute.xlu0 %735 }
 0x604   :  { %756 = vmatpush.msrb.mxu0 %v736_v27  ;;  %v1139_v27 = vld [vmem:[%s3446_s11 + $0x18] sm:$0xff] }
 0x606   :  { %868 = vmatpush.msra.mxu0 %v3037_v39 }
 0x60b   :  { %v966_v35 = vpop.permute.xlu0 %965 }
 0x611   :  { %963 = vrot.lane.b32.xlu2 %v3051_v47, %s2766_s7 }
 0x619   :  { %801 = vrot.lane.b32.xlu2 %v3051_v47, %s2768_s8 }
 0x66c   :  { %v732_v30 = vpop.xlane.xlu2 %731 }
 0x66d   :  { %2307 = vrcp.f32 %v732_v30 }
 0x673   :  { %v2308_v31 = vpop.eup %2307 }
 0x674   :  { %v964_v32 = vpop.permute.xlu2 %963  ;;  %v734_v33 = vmul.f32 %v2308_v31, %v2306_v22 }
 0x675   :  { %v666_v34 = vpop.f32.mrf.mxu2 }
 0x676   :  { %2183 = vmatmul.msk.f32.vlgmr.msra.gmra.mxu1 %vm338_vm1, %v666_v34  ;;  %2186 = vmatmul.msk.f32.vlgmr.msrb.gmra.mxu0 %vm338_vm1, %v734_v33  ;;  %v1175_v33 = vld [vmem:[#allocation10 + $0x10] sm:$0xff]  ;;  %v1137_v34 = vld [vmem:[%s3446_s11 + $0x8] sm:$0xff] }
 0x677   :  { %2196 = vmatpush.xpose.msk.msrb.mxu0 %vm338_vm1, %v966_v35  ;;  %v1174_v35 = vld [vmem:[#allocation10 + $0x8] sm:$0xff] }
 0x67c   :  { %v802_v36 = vpop.permute.xlu2 %801 }
 0x67d   :  { %v786_v37 = vpop.f32.mrf.mxu2  ;;  %822 = vmatpush.msrb.mxu1 %v802_v36  ;;  %v1173_v36 = vld [vmem:[#allocation10] sm:$0xff] }
 0x67e   :  { %v789_v38 = vsel %vm695_vm3, -1e+09, %v786_v37 }
 0x67f   :  { %v790_v39 = vsel %vm338_vm1, %v789_v38, -inf }
 0x680   :  { %791 = vmax.xlane.f32.xlu1 %v790_v39 }
 0x685   :  { %v898_v40 = vpop.f32.mrf.mxu2 }
 0x686   :  { %v901_v41 = vsel %vm695_vm3, -1e+09, %v898_v40  ;;  %v1136_v40 = vld [vmem:[%s3446_s11] sm:$0xff] }
 0x687   :  { %v902_v42 = vsel %vm338_vm1, %v901_v41, -inf }
 0x688   :  { %903 = vmax.xlane.f32.xlu0 %v902_v42 }
 0x69c   :  { %913 = vrot.lane.b32.xlu0 %v3051_v47, %s2771_s15 }
 0x6f3   :  { %v792_v43 = vpop.xlane.xlu1 %791  ;;  %v758_v45 = vpop.f32.mrf.mxu0 }
 0x6f4   :  { %v793_v44 = vsub.f32 %v789_v38, %v792_v43  ;;  %2191 = vmatmul.msk.f32.vlgmr.msra.gmra.mxu0 %vm338_vm1, %v758_v45  ;;  %v689_v54 = vpop.f32.mrf.mxu1  ;;  %v287_v38 = vld [vmem:[#allocation5] sm:$0xff] }
 0x6f5   :  { %v692_v56 = vadd.f32 %v689_v54, %v602_v55  ;;  %v3183_v54 = vld [vmem:[%s3445_s10] ss:$0 sm:$0xff] }
 0x6f6   :  { %v794_v46 = vmul.f32 1.442695, %v793_v44 }
 0x6f7   :  { %v1057_v59 = vadd.f32 %v3133_v57, %v692_v56 }
 0x6f8   :  { %2309 = vpow2.f32 %v794_v46 }
 0x6f9   :  { %v1061_v61 = vadd.f32 %v1057_v59, %v2980_v4 }
 0x6fb   :  { %v904_v48 = vpop.xlane.xlu0 %903  ;;  %v1063_v63 = vsel %vm299_vm0, %v1061_v61, 0.0 }
 0x6fc   :  { %v905_v49 = vsub.f32 %v901_v41, %v904_v48  ;;  %2197 = vmatmul.msk.f32.vlgmr.msrb.gmra.mxu0 %vm338_vm1, %v964_v32  ;;  %v1138_v32 = vld [vmem:[%s3446_s11 + $0x10] sm:$0xff] }
 0x6fe   :  { %v2310_v50 = vpop.eup %2309  ;;  %v906_v51 = vmul.f32 1.442695, %v905_v49 }
 0x6ff   :  { %v796_v53 = vsel %vm338_vm1, %v2310_v50, 0.0 }
 0x700   :  { %2311 = vpow2.f32 %v906_v51  ;;  %797 = vadd.xlane.f32.xlu1 %v796_v53 }
 0x701   :  { %2313 = vrcp.f32 %v2772_v0 }
 0x706   :  { %v2312_v58 = vpop.eup %2311 }
 0x707   :  { %v908_v60 = vsel %vm338_vm1, %v2312_v58, 0.0  ;;  %v2314_v2 = vpop.eup %2313 }
 0x708   :  { %909 = vadd.xlane.f32.xlu1 %v908_v60  ;;  %v1070_v3 = vmul.f32 32.0, %v2314_v2  ;;  %vm1074_vm4 = vweird.f32 %v2314_v2 }
 0x70a   :  { %v1071_v7 = vsub.f32 1.0, %v1070_v3 }
 0x70c   :  { %v1072_v8 = vmul.f32 %v2314_v2, %v1071_v7 }
 0x70e   :  { %v914_v62 = vpop.permute.xlu0 %913  ;;  %v1073_v15 = vadd.f32 %v2314_v2, %v1072_v8  ;;  %v3209_v8 = vld [vmem:[%s3447_s12] ss:$0 sm:$0xff] }
 0x70f   :  { %934 = vmatpush.msra.mxu1 %v914_v62 }
 0x710   :  { %1064 = vadd.xlane.f32.xlu1 %v1063_v63  ;;  %v3146_v16 = vsel %vm1074_vm4, %v2314_v2, %v1073_v15  ;;  %v3196_v63 = vld [vmem:[%s3449_s14] ss:$0 sm:$0xff]  ;;  %v3222_v15 = vld [vmem:[#allocation8] sm:$0xff] }
 0x711   :  { %vm1215_vm8 = vcmp.gt.f32.partialorder %v3222_v15, 0.0 }
 0x771   :  { %v3139_v5 = vpop.f32.mrf.mxu0 }
 0x773   :  { %v798_v6 = vpop.xlane.xlu1 %797 }
 0x774   :  { %2315 = vrcp.f32 %v798_v6 }
 0x779   :  { %v988_v4 = vpop.f32.mrf.mxu0 }
 0x77a   :  { %v2316_v9 = vpop.eup %2315  ;;  %v991_v12 = vsel %vm695_vm3, -1e+09, %v988_v4 }
 0x77b   :  { %v800_v11 = vmul.f32 %v2316_v9, %v2310_v50  ;;  %v910_v13 = vpop.xlane.xlu1 %909  ;;  %v992_v14 = vsel %vm338_vm1, %v991_v12, -inf }
 0x77c   :  { %2317 = vrcp.f32 %v910_v13  ;;  %993 = vmax.xlane.f32.xlu1 %v992_v14 }
 0x77d   :  { %2189 = vmatmul.msk.f32.vlgmr.msrb.gmra.mxu1 %vm338_vm1, %v800_v11 }
 0x77e   :  { %1047 = vmatpush.msrb.mxu1 %v3110_v29  ;;  %v1176_v29 = vld [vmem:[#allocation10 + $0x18] sm:$0xff] }
 0x77f   :  { %1199 = vmatpush.msra.mxu0 %v1176_v29 }
 0x781   :  { %1200 = vmatpush.msra.mxu0 %v1175_v33 }
 0x782   :  { %v2318_v17 = vpop.eup %2317 }
 0x783   :  { %v912_v18 = vmul.f32 %v2318_v17, %v2312_v58  ;;  %v1065_v19 = vpop.xlane.xlu1 %1064  ;;  %1201 = vmatpush.msra.mxu0 %v1174_v35 }
 0x784   :  { %v1076_v20 = vmul.f32 %v3146_v16, %v1065_v19 }
 0x785   :  { %2194 = vmatmul.msk.f32.vlgmr.msra.gmra.mxu1 %vm338_vm1, %v912_v18  ;;  %1202 = vmatpush.msra.mxu0 %v1173_v36 }
 0x786   :  { %v1078_v10 = vsub.f32 %v1061_v61, %v1076_v20  ;;  %2202 = vmatmul.msk.f32.vlgmr.msra.gmra.mxu0 %vm299_vm0, %v287_v38 }
 0x788   :  { %v1080_v21 = vmul.f32 %v1078_v10, %v1078_v10 }
 0x78a   :  { %v1082_v22 = vsel %vm299_vm0, %v1080_v21, 0.0 }
 0x78b   :  { %1083 = vadd.xlane.f32.xlu2 %v1082_v22 }
 0x795   :  { %1126 = vperm.xlu1 %2274, %v289_v23  }
 0x79d   :  { %1003 = vrot.lane.b32.xlu1 %v3051_v47, %s2770_s26 }
 0x7ef   :  { %v994_v24 = vpop.xlane.xlu1 %993 }
 0x7f0   :  { %v995_v25 = vsub.f32 %v991_v12, %v994_v24 }
 0x7f2   :  { %v996_v26 = vmul.f32 1.442695, %v995_v25 }
 0x7f4   :  { %2319 = vpow2.f32 %v996_v26 }
 0x7fa   :  { %v824_v30 = vpop.f32.mrf.mxu1  ;;  %v2320_v31 = vpop.eup %2319 }
 0x7fb   :  { %2190 = vmatmul.msk.f32.vlgmr.msra.gmra.mxu3 %vm338_vm1, %v824_v30  ;;  %v998_v47 = vsel %vm338_vm1, %v2320_v31, 0.0 }
 0x7fc   :  { %1162 = vmatpush.msra.mxu3 %v1139_v27  ;;  %999 = vadd.xlane.f32.xlu0 %v998_v47 }
 0x7fe   :  { %v1084_v37 = vpop.xlane.xlu2 %1083  ;;  %1163 = vmatpush.msra.mxu3 %v1138_v32 }
 0x7ff   :  { %v1088_v39 = vmul.f32 %v1084_v37, %v3146_v16 }
 0x800   :  { %1164 = vmatpush.msra.mxu3 %v1137_v34 }
 0x801   :  { %v1090_v41 = vadd.f32 1e-05, %v1088_v39 }
 0x802   :  { %v936_v42 = vpop.f32.mrf.mxu1  ;;  %1165 = vmatpush.msra.mxu3 %v1136_v40 }
 0x803   :  { %2321 = vrsqrt.f32 %v1090_v41  ;;  %2195 = vmatmul.msk.f32.vlgmr.msrb.gmra.mxu3 %vm338_vm1, %v936_v42  ;;  %vm1098_vm6 = vweird.f32 %v1090_v41  ;;  %v1204_v1 = vpop.f32.mrf.mxu0 }
 0x804   :  { %v3199_v2 = vadd.f32 %v3196_v63, %v1204_v1 }
 0x806   :  { %1282 = vrot.lane.b32.xlu2 %v3199_v2, %s2761_s29 }
 0x807   :  { %v3173_v43 = vpop.permute.xlu1 %1126 }
 0x809   :  { %v2322_v44 = vpop.eup %2321 }
 0x80a   :  { %v1093_v45 = vmul.f32 %v2322_v44, %v1090_v41  ;;  %vm1099_vm5 = vweird.f32 %v2322_v44 }
 0x80b   :  { %vm1100_vm7 = vmor %vm1098_vm6, %vm1099_vm5 }
 0x80c   :  { %v1094_v46 = vmul.f32 %v2322_v44, %v1093_v45 }
 0x80e   :  { %v1095_v48 = vmul.f32 0.5, %v1094_v46 }
 0x80f   :  { %v1004_v50 = vpop.permute.xlu1 %1003 }
 0x810   :  { %v1096_v49 = vsub.f32 1.5, %v1095_v48  ;;  %1024 = vmatpush.msrb.mxu2 %v1004_v50 }
 0x812   :  { %v1097_v51 = vmul.f32 %v2322_v44, %v1096_v49  ;;  %2204 = vmatpush.xpose.msk.msra.mxu2 %vm338_vm1, %v3199_v2 }
 0x814   :  { %v1101_v53 = vsel %vm1100_vm7, %v2322_v44, %v1097_v51 }
 0x815   :  { %v1112_v55 = vmul.f32 %v1101_v53, %v1078_v10 }
 0x817   :  { %v1117_v56 = vmul.f32 %v3178_v52, %v1112_v55 }
 0x819   :  { %v1122_v58 = vadd.f32 %v3183_v54, %v1117_v56  ;;  %v290_v56 = vld [vmem:[%s3482_s19 + $0x8] sm:$0xff] }
 0x81b   :  { %v3188_v59 = vmul.f32 %v3173_v43, %v1122_v58  ;;  %v288_v58 = vld [vmem:[#allocation5 + $0x8] sm:$0xff] }
 0x81c   :  { %2203 = vmatmul.msk.f32.gmra.mxu0 %vm299_vm0, %v288_v58 }
 0x81d   :  { %2200 = vmatmul.msk.f32.vlgmr.msra.gmra.mxu3 %vm299_vm0, %v3188_v59 }
 0x86f   :  { %v1000_v60 = vpop.xlane.xlu0 %999 }
 0x870   :  { %2323 = vrcp.f32 %v1000_v60 }
 0x876   :  { %v2324_v61 = vpop.eup %2323 }
 0x877   :  { %v1002_v62 = vmul.f32 %v2324_v61, %v2320_v31  ;;  %v3260_v61 = vld [vmem:[#allocation11] sm:$0xff] }
 0x878   :  { %1387 = vmatpush.msrb.mxu0 %v3260_v61 }
 0x879   :  { %2198 = vmatmul.msk.f32.vlgmr.msrb.gmra.mxu2 %vm338_vm1, %v1002_v62 }
 0x87e   :  { %v847_v0 = vpop.f32.mrf.mxu3 }
 0x87f   :  { %v871_v3 = vadd.f32 %v3139_v5, %v847_v0  ;;  %v1283_v5 = vpop.permute.xlu2 %1282 }
 0x880   :  { %2207 = vmatpush.xpose.msk.msrb.mxu2 %vm338_vm1, %v1283_v5 }
 0x886   :  { %v959_v6 = vpop.f32.mrf.mxu3 }
 0x887   :  { %v962_v7 = vadd.f32 %v959_v6, %v871_v3 }
 0x8a0   :  { %v1167_v9 = vpop.f32.mrf.mxu3 }
 0x8a1   :  { %v1168_v4 = vadd.f32 %v3209_v8, %v1167_v9 }
 0x8a3   :  { %1392 = vrot.lane.b32.xlu0 %v1168_v4, %s2764_s17  ;;  %1280 = vrot.lane.b32.xlu1 %v1168_v4, %s2761_s29 }
 0x8a4   :  { %2205 = vmatmul.msk.f32.vlgmr.msra.gmra.mxu2 %vm338_vm1, %v1168_v4 }
 0x8ab   :  { %1394 = vrot.lane.b32.xlu1 %v3199_v2, %s2764_s17 }
 0x8fc   :  { %v1026_v11 = vpop.f32.mrf.mxu2 }
 0x8fd   :  { %2199 = vmatmul.msk.f32.vlgmr.msrb.gmra.mxu1 %vm338_vm1, %v1026_v11 }
 0x915   :  { %v1281_v12 = vpop.permute.xlu1 %1280  ;;  %v1393_v14 = vpop.permute.xlu0 %1392 }
 0x916   :  { %2208 = vmatmul.msk.f32.vlgmr.msrb.gmra.mxu2 %vm338_vm1, %v1281_v12 }
 0x91d   :  { %v1395_v13 = vpop.permute.xlu1 %1394 }
 0x91e   :  { %2212 = vmatpush.xpose.msk.msra.mxu2 %vm338_vm1, %v1395_v13 }
 0x921   :  { %2213 = vmatmul.msk.f32.vlgmr.msra.gmra.mxu2 %vm338_vm1, %v1393_v14 }
 0x927   :  { %v1239_v17 = vpop.f32.mrf.mxu2 }
 0x928   :  { %v1242_v18 = vsel %vm1215_vm8, -1e+09, %v1239_v17 }
 0x929   :  { %v1243_v19 = vsel %vm338_vm1, %v1242_v18, -inf }
 0x92a   :  { %1244 = vmax.xlane.f32.xlu2 %v1243_v19 }
 0x97a   :  { %v1049_v20 = vpop.f32.mrf.mxu1 }
 0x97b   :  { %v1052_v10 = vadd.f32 %v1049_v20, %v962_v7 }
 0x97d   :  { %v1058_v21 = vadd.f32 %v3133_v57, %v1052_v10 }
 0x97f   :  { %v1062_v22 = vadd.f32 %v1058_v21, %v3026_v28 }
 0x981   :  { %v1066_v23 = vsel %vm299_vm0, %v1062_v22, 0.0 }
 0x982   :  { %1067 = vadd.xlane.f32.xlu1 %v1066_v23 }
 0x999   :  { %v1305_v24 = vpop.f32.mrf.mxu2 }
 0x99a   :  { %v1308_v25 = vsel %vm1215_vm8, -1e+09, %v1305_v24 }
 0x99b   :  { %v1309_v26 = vsel %vm338_vm1, %v1308_v25, -inf }
 0x99c   :  { %1310 = vmax.xlane.f32.xlu0 %v1309_v26 }
 0x99d   :  { %v1245_v27 = vpop.xlane.xlu2 %1244 }
 0x99e   :  { %v1246_v29 = vsub.f32 %v1242_v18, %v1245_v27 }
 0x9a0   :  { %v1247_v30 = vmul.f32 1.442695, %v1246_v29  ;;  %v1207_v29 = vpop.f32.mrf.mxu0 }
 0x9a2   :  { %2325 = vpow2.f32 %v1247_v30  ;;  %v3280_v30 = vadd.f32 %v3196_v63, %v1207_v29 }
 0x9a4   :  { %v1417_v31 = vpop.f32.mrf.mxu2 }
 0x9a5   :  { %v1420_v57 = vsel %vm1215_vm8, -1e+09, %v1417_v31 }
 0x9a6   :  { %v1421_v28 = vsel %vm338_vm1, %v1420_v57, -inf }
 0x9a7   :  { %1422 = vmax.xlane.f32.xlu1 %v1421_v28 }
 0x9a8   :  { %v2326_v32 = vpop.eup %2325 }
 0x9a9   :  { %v1249_v33 = vsel %vm338_vm1, %v2326_v32, 0.0 }
 0x9af   :  { %1250 = vadd.xlane.f32.xlu1 %v1249_v33 }
 0x9b0   :  { %1254 = vrot.lane.b32.xlu0 %v3199_v2, %s2762_s6 }
 0x9b8   :  { %1432 = vrot.lane.b32.xlu0 %v3199_v2, %s2769_s20 }
 0x9c0   :  { %1482 = vrot.lane.b32.xlu0 %v1168_v4, %s2766_s7 }
 0x9c8   :  { %1613 = vrot.lane.b32.xlu0 %v3280_v30, %s2762_s6 }
 0x9f5   :  { %v1068_v47 = vpop.xlane.xlu1 %1067 }
 0x9f6   :  { %v1077_v34 = vmul.f32 %v3146_v16, %v1068_v47 }
 0x9f8   :  { %v3244_v35 = vsub.f32 %v1062_v22, %v1077_v34 }
 0x9fa   :  { %v1081_v36 = vmul.f32 %v3244_v35, %v3244_v35 }
 0x9fc   :  { %v1085_v37 = vsel %vm299_vm0, %v1081_v36, 0.0 }
 0x9fd   :  { %1086 = vadd.xlane.f32.xlu2 %v1085_v37 }
 0xa0f   :  { %v1311_v38 = vpop.xlane.xlu0 %1310 }
 0xa10   :  { %v1312_v39 = vsub.f32 %v1308_v25, %v1311_v38 }
 0xa12   :  { %v1313_v40 = vmul.f32 1.442695, %v1312_v39  ;;  %v3298_v39 = vld [vmem:[#allocation8 + $0x8] sm:$0xff] }
 0xa13   :  { %vm1574_vm12 = vcmp.gt.f32.partialorder %v3298_v39, 0.0 }
 0xa14   :  { %2327 = vpow2.f32 %v1313_v40 }
 0xa1a   :  { %v2328_v41 = vpop.eup %2327  ;;  %v1423_v42 = vpop.xlane.xlu1 %1422 }
 0xa1b   :  { %v1424_v44 = vsub.f32 %v1420_v57, %v1423_v42  ;;  %v1315_v45 = vsel %vm338_vm1, %v2328_v41, 0.0 }
 0xa1c   :  { %1316 = vadd.xlane.f32.xlu2 %v1315_v45 }
 0xa1d   :  { %v1425_v46 = vmul.f32 1.442695, %v1424_v44 }
 0xa1f   :  { %2329 = vpow2.f32 %v1425_v46 }
 0xa22   :  { %v1255_v48 = vpop.permute.xlu0 %1254  ;;  %v1251_v49 = vpop.xlane.xlu1 %1250 }
 0xa23   :  { %2331 = vrcp.f32 %v1251_v49  ;;  %1275 = vmatpush.msra.mxu1 %v1255_v48 }
 0xa25   :  { %v2330_v50 = vpop.eup %2329 }
 0xa26   :  { %v1427_v51 = vsel %vm338_vm1, %v2330_v50, 0.0 }
 0xa27   :  { %1428 = vadd.xlane.f32.xlu1 %v1427_v51 }
 0xa29   :  { %v2332_v53 = vpop.eup %2331 }
 0xa2a   :  { %v1253_v55 = vmul.f32 %v2332_v53, %v2326_v32  ;;  %v1433_v11 = vpop.permute.xlu0 %1432 }
 0xa2c   :  { %2206 = vmatmul.msk.f32.vlgmr.msra.gmra.mxu1 %vm338_vm1, %v1253_v55 }
 0xa32   :  { %v1483_v24 = vpop.permute.xlu0 %1482 }
 0xa34   :  { %1320 = vrot.lane.b32.xlu2 %v3199_v2, %s2763_s2 }
 0xa3c   :  { %1484 = vrot.lane.b32.xlu2 %v3199_v2, %s2766_s7 }
 0xa40   :  { %1131 = vperm.xlu1 %2274, %v290_v56  }
 0xa70   :  { %v1087_v60 = vpop.xlane.xlu2 %1086 }
 0xa71   :  { %v1089_v62 = vmul.f32 %v1087_v60, %v3146_v16 }
 0xa73   :  { %v1091_v0 = vadd.f32 1e-05, %v1089_v62 }
 0xa75   :  { %2333 = vrsqrt.f32 %v1091_v0  ;;  %vm1108_vm10 = vweird.f32 %v1091_v0 }
 0xa7b   :  { %v2334_v1 = vpop.eup %2333 }
 0xa7c   :  { %v1103_v6 = vmul.f32 %v2334_v1, %v1091_v0  ;;  %vm1109_vm9 = vweird.f32 %v2334_v1 }
 0xa7d   :  { %vm1110_vm11 = vmor %vm1108_vm10, %vm1109_vm9 }
 0xa7e   :  { %v1104_v9 = vmul.f32 %v2334_v1, %v1103_v6 }
 0xa80   :  { %v1105_v12 = vmul.f32 0.5, %v1104_v9 }
 0xa82   :  { %v1106_v14 = vsub.f32 1.5, %v1105_v12 }
 0xa84   :  { %v1107_v19 = vmul.f32 %v2334_v1, %v1106_v14 }
 0xa86   :  { %v1111_v10 = vsel %vm1110_vm11, %v2334_v1, %v1107_v19 }
 0xa87   :  { %v1113_v22 = vmul.f32 %v1111_v10, %v3244_v35  ;;  %v1614_v35 = vpop.permute.xlu0 %1613 }
 0xa89   :  { %v1118_v23 = vmul.f32 %v3178_v52, %v1113_v22  ;;  %v1211_v52 = vld [vmem:[#allocation11 + $0x8] sm:$0xff] }
 0xa8a   :  { %1364 = vmatpush.msrb.mxu3 %v1211_v52 }
 0xa8b   :  { %v1123_v25 = vadd.f32 %v3183_v54, %v1118_v23  ;;  %v1212_v54 = vld [vmem:[#allocation11 + $0x10] sm:$0xff] }
 0xa8c   :  { %1476 = vmatpush.msra.mxu3 %v1212_v54 }
 0xa8f   :  { %v1317_v3 = vpop.xlane.xlu2 %1316 }
 0xa90   :  { %2335 = vrcp.f32 %v1317_v3 }
 0xa96   :  { %v2336_v7 = vpop.eup %2335 }
 0xa97   :  { %v1319_v4 = vmul.f32 %v2336_v7, %v2328_v41  ;;  %v1321_v5 = vpop.permute.xlu2 %1320 }
 0xa98   :  { %1341 = vmatpush.msrb.mxu1 %v1321_v5 }
 0xa99   :  { %2209 = vmatmul.msk.f32.vlgmr.msrb.gmra.mxu1 %vm338_vm1, %v1319_v4  ;;  %v3322_v4 = vld [vmem:[#allocation11 + $0x18] sm:$0xff] }
 0xa9a   :  { %1453 = vmatpush.msra.mxu1 %v1433_v11  ;;  %v1429_v13 = vpop.xlane.xlu1 %1428 }
 0xa9b   :  { %2337 = vrcp.f32 %v1429_v13 }
 0xa9c   :  { %1566 = vmatpush.msrb.mxu1 %v3322_v4 }
 0xa9f   :  { %v1485_v17 = vpop.permute.xlu2 %1484 }
 0xaa0   :  { %2216 = vmatpush.xpose.msk.msra.mxu0 %vm338_vm1, %v1485_v17 }
 0xaa1   :  { %v2338_v18 = vpop.eup %2337 }
 0xaa2   :  { %v1431_v20 = vmul.f32 %v2338_v18, %v2330_v50 }
 0xaa4   :  { %2214 = vmatmul.msk.f32.vlgmr.msra.gmra.mxu1 %vm338_vm1, %v1431_v20 }
 0xaa9   :  { %v1277_v21 = vpop.f32.mrf.mxu1 }
 0xaaa   :  { %2211 = vmatmul.msk.f32.vlgmr.msrb.gmra.mxu0 %vm338_vm1, %v1277_v21 }
 0xaab   :  { %1634 = vmatpush.msrb.mxu0 %v1614_v35 }
 0xab2   :  { %v3271_v26 = vpop.permute.xlu1 %1131  ;;  %2217 = vmatmul.msk.f32.vlgmr.msra.gmra.mxu0 %vm338_vm1, %v1483_v24 }
 0xab3   :  { %v3275_v27 = vmul.f32 %v3271_v26, %v1123_v25  ;;  %1746 = vmatpush.msra.mxu0 %v3260_v61 }
 0xab5   :  { %2201 = vmatmul.msk.f32.gmra.mxu3 %vm299_vm0, %v3275_v27 }
 0xb16   :  { %v1343_v31 = vpop.f32.mrf.mxu1 }
 0xb17   :  { %2210 = vmatmul.msk.f32.vlgmr.msrb.gmra.mxu3 %vm338_vm1, %v1343_v31 }
 0xb18   :  { %2220 = vmatpush.xpose.msk.msrb.mxu3 %vm338_vm1, %v3280_v30 }
 0xb21   :  { %v1455_v57 = vpop.f32.mrf.mxu1 }
 0xb22   :  { %2215 = vmatmul.msk.f32.vlgmr.msra.gmra.mxu3 %vm338_vm1, %v1455_v57 }
 0xb23   :  { %1723 = vmatpush.msra.mxu3 %v1211_v52 }
 0xb27   :  { %v1389_v28 = vpop.f32.mrf.mxu0 }
 0xb2f   :  { %v1507_v63 = vpop.f32.mrf.mxu0 }
 0xb30   :  { %v1510_v32 = vsel %vm1215_vm8, -1e+09, %v1507_v63 }
 0xb31   :  { %v1511_v33 = vsel %vm338_vm1, %v1510_v32, -inf }
 0xb32   :  { %1512 = vmax.xlane.f32.xlu0 %v1511_v33 }
 0xb38   :  { %v1170_v47 = vpop.f32.mrf.mxu3 }
 0xb39   :  { %v1171_v34 = vadd.f32 %v3209_v8, %v1170_v47 }
 0xb3b   :  { %2221 = vmatmul.msk.f32.vlgmr.msrb.gmra.mxu3 %vm338_vm1, %v1171_v34 }
 0xb3c   :  { %1835 = vmatpush.msrb.mxu3 %v1212_v54 }
 0xb46   :  { %1639 = vrot.lane.b32.xlu0 %v1171_v34, %s2761_s29 }
 0xb4e   :  { %1751 = vrot.lane.b32.xlu0 %v1171_v34, %s2764_s17 }
 0xb9a   :  { %v1366_v36 = vpop.f32.mrf.mxu3 }
 0xb9b   :  { %v1390_v15 = vadd.f32 %v1389_v28, %v1366_v36 }
 0xba5   :  { %v1478_v37 = vpop.f32.mrf.mxu3  ;;  %v1513_v42 = vpop.xlane.xlu0 %1512 }
 0xba6   :  { %v3296_v38 = vadd.f32 %v1478_v37, %v1390_v15  ;;  %v1514_v46 = vsub.f32 %v1510_v32, %v1513_v42 }
 0xba8   :  { %v1515_v49 = vmul.f32 1.442695, %v1514_v46 }
 0xbb8   :  { %v1640_v6 = vpop.permute.xlu0 %1639 }
 0xbbe   :  { %v1598_v8 = vpop.f32.mrf.mxu3 }
 0xbbf   :  { %v1601_v40 = vsel %vm1574_vm12, -1e+09, %v1598_v8 }
 0xbc0   :  { %v1602_v41 = vsel %vm338_vm1, %v1601_v40, -inf  ;;  %v1752_v9 = vpop.permute.xlu0 %1751 }
 0xbc1   :  { %1603 = vmax.xlane.f32.xlu1 %v1602_v41 }
 0xbda   :  { %1522 = vrot.lane.b32.xlu1 %v3199_v2, %s2765_s18 }
 0xbe2   :  { %1753 = vrot.lane.b32.xlu1 %v3280_v30, %s2764_s17 }
 0xbea   :  { %1841 = vrot.lane.b32.xlu1 %v1171_v34, %s2766_s7  ;;  %v3346_v34 = vld [vmem:[#allocation13] ss:$0 sm:$0xff] }
 0xc34   :  { %v1604_v44 = vpop.xlane.xlu1 %1603 }
 0xc35   :  { %v1605_v45 = vsub.f32 %v1601_v40, %v1604_v44 }
 0xc37   :  { %v1606_v48 = vmul.f32 1.442695, %v1605_v45 }
 0xc39   :  { %2339 = vpow2.f32 %v1606_v48 }
 0xc3a   :  { %2341 = vpow2.f32 %v1515_v49 }
 0xc3f   :  { %v2340_v50 = vpop.eup %2339 }
 0xc40   :  { %v1608_v51 = vsel %vm338_vm1, %v2340_v50, 0.0  ;;  %v2342_v53 = vpop.eup %2341 }
 0xc41   :  { %1609 = vadd.xlane.f32.xlu2 %v1608_v51  ;;  %v1517_v2 = vsel %vm338_vm1, %v2342_v53, 0.0 }
 0xc49   :  { %1518 = vadd.xlane.f32.xlu2 %v1517_v2 }
 0xc4c   :  { %v1523_v55 = vpop.permute.xlu1 %1522 }
 0xc4d   :  { %1543 = vmatpush.msrb.mxu2 %v1523_v55 }
 0xc54   :  { %v1754_v3 = vpop.permute.xlu1 %1753 }
 0xc5c   :  { %v1842_v11 = vpop.permute.xlu1 %1841 }
 0xc61   :  { %1641 = vrot.lane.b32.xlu2 %v3280_v30, %s2761_s29 }
 0xc69   :  { %1843 = vrot.lane.b32.xlu2 %v3280_v30, %s2766_s7 }
 0xcb4   :  { %v1610_v56 = vpop.xlane.xlu2 %1609 }
 0xcb5   :  { %2343 = vrcp.f32 %v1610_v56 }
 0xcbb   :  { %v2344_v58 = vpop.eup %2343 }
 0xcbc   :  { %v1612_v60 = vmul.f32 %v2344_v58, %v2340_v50  ;;  %v1519_v61 = vpop.xlane.xlu2 %1518 }
 0xcbd   :  { %2345 = vrcp.f32 %v1519_v61 }
 0xcbe   :  { %2222 = vmatmul.msk.f32.vlgmr.msrb.gmra.mxu0 %vm338_vm1, %v1612_v60 }
 0xcc3   :  { %v2346_v62 = vpop.eup %2345 }
 0xcc4   :  { %v1521_v0 = vmul.f32 %v2346_v62, %v2342_v53  ;;  %v1642_v1 = vpop.permute.xlu2 %1641 }
 0xcc5   :  { %2223 = vmatpush.xpose.msk.msra.mxu2 %vm338_vm1, %v1642_v1  ;;  %v1999_v1 = vld [vmem:[#allocation17 + $0x10] sm:$0xff] }
 0xcc6   :  { %2218 = vmatmul.msk.f32.vlgmr.msrb.gmra.mxu2 %vm338_vm1, %v1521_v0  ;;  %v2000_v0 = vld [vmem:[#allocation17 + $0x18] sm:$0xff] }
 0xcc9   :  { %2228 = vmatpush.xpose.msk.msrb.mxu2 %vm338_vm1, %v1754_v3  ;;  %v1998_v3 = vld [vmem:[#allocation17 + $0x8] sm:$0xff] }
 0xccc   :  { %v1844_v7 = vpop.permute.xlu2 %1843 }
 0xccd   :  { %2232 = vmatpush.xpose.msk.msrb.mxu0 %vm338_vm1, %v1844_v7 }
 0xcce   :  { %2224 = vmatmul.msk.f32.vlgmr.msra.gmra.mxu2 %vm338_vm1, %v1640_v6  ;;  %v1997_v6 = vld [vmem:[#allocation17] sm:$0xff] }
 0xcd6   :  { %2229 = vmatmul.msk.f32.vlgmr.msrb.gmra.mxu2 %vm338_vm1, %v1752_v9 }
 0xd3b   :  { %v1636_v5 = vpop.f32.mrf.mxu0 }
 0xd3c   :  { %2227 = vmatmul.msk.f32.vlgmr.msra.gmra.mxu0 %vm338_vm1, %v1636_v5 }
 0xd44   :  { %2233 = vmatmul.msk.f32.vlgmr.msrb.gmra.mxu0 %vm338_vm1, %v1842_v11 }
 0xd49   :  { %v1545_v12 = vpop.f32.mrf.mxu2 }
 0xd4a   :  { %2219 = vmatmul.msk.f32.vlgmr.msrb.gmra.mxu1 %vm338_vm1, %v1545_v12 }
 0xd51   :  { %v1664_v13 = vpop.f32.mrf.mxu2 }
 0xd52   :  { %v1667_v14 = vsel %vm1574_vm12, -1e+09, %v1664_v13 }
 0xd53   :  { %v1668_v17 = vsel %vm338_vm1, %v1667_v14, -inf }
 0xd54   :  { %1669 = vmax.xlane.f32.xlu0 %v1668_v17 }
 0xd59   :  { %v1776_v18 = vpop.f32.mrf.mxu2 }
 0xd5a   :  { %v1779_v19 = vsel %vm1574_vm12, -1e+09, %v1776_v18  ;;  %v3363_v18 = vld [vmem:[#allocation14] ss:$0 sm:$0xff] }
 0xd5b   :  { %v1780_v20 = vsel %vm338_vm1, %v1779_v19, -inf }
 0xd5c   :  { %1781 = vmax.xlane.f32.xlu2 %v1780_v20  ;;  %v3365_v20 = vld [vmem:[#allocation16] ss:$0 sm:$0xff] }
 0xdb9   :  { %v3334_v10 = vpop.f32.mrf.mxu0 }
 0xdc1   :  { %v1866_v21 = vpop.f32.mrf.mxu0 }
 0xdc2   :  { %v1869_v22 = vsel %vm1574_vm12, -1e+09, %v1866_v21 }
 0xdc3   :  { %v1870_v23 = vsel %vm338_vm1, %v1869_v22, -inf }
 0xdc4   :  { %1871 = vmax.xlane.f32.xlu1 %v1870_v23 }
 0xdc7   :  { %v1670_v24 = vpop.xlane.xlu0 %1669  ;;  %v1568_v33 = vpop.f32.mrf.mxu1 }
 0xdc8   :  { %v1671_v25 = vsub.f32 %v1667_v14, %v1670_v24  ;;  %v1571_v47 = vadd.f32 %v1568_v33, %v3296_v38 }
 0xdca   :  { %v1672_v29 = vmul.f32 1.442695, %v1671_v25  ;;  %v1935_v35 = vadd.f32 %v3346_v34, %v1571_v47  ;;  %v2043_v25 = vld [vmem:[%s3456_s21 + $0x38] sm:$0xff] }
 0xdcb   :  { %2063 = vmatpush.msra.mxu0 %v2043_v25 }
 0xdcc   :  { %2347 = vpow2.f32 %v1672_v29  ;;  %v1939_v36 = vadd.f32 %v1935_v35, %v3188_v59  ;;  %v2042_v29 = vld [vmem:[%s3456_s21 + $0x30] sm:$0xff]  ;;  %v3396_v35 = vld [vmem:[#allocation19] ss:$0 sm:$0xff] }
 0xdcd   :  { %2064 = vmatpush.msra.mxu0 %v2042_v29 }
 0xdce   :  { %v1941_v15 = vsel %vm299_vm0, %v1939_v36, 0.0 }
 0xdcf   :  { %v1782_v52 = vpop.xlane.xlu2 %1781 }
 0xdd0   :  { %v1783_v54 = vsub.f32 %v1779_v19, %v1782_v52  ;;  %v2041_v52 = vld [vmem:[%s3456_s21 + $0x28] sm:$0xff] }
 0xdd1   :  { %2065 = vmatpush.msra.mxu0 %v2041_v52  ;;  %v2288_v52 = vld [vmem:[#allocation23] ss:$0 sm:$0xff] }
 0xdd2   :  { %v2348_v31 = vpop.eup %2347  ;;  %v1784_v57 = vmul.f32 1.442695, %v1783_v54  ;;  %v2040_v54 = vld [vmem:[%s3456_s21 + $0x20] sm:$0xff] }
 0xdd3   :  { %v1674_v28 = vsel %vm338_vm1, %v2348_v31, 0.0  ;;  %2066 = vmatpush.msra.mxu0 %v2040_v54 }
 0xdd4   :  { %2349 = vpow2.f32 %v1784_v57  ;;  %1675 = vadd.xlane.f32.xlu0 %v1674_v28  ;;  %v2038_v28 = vld [vmem:[%s3456_s21 + $0x10] sm:$0xff] }
 0xdda   :  { %v2350_v63 = vpop.eup %2349 }
 0xddb   :  { %v1786_v32 = vsel %vm338_vm1, %v2350_v63, 0.0 }
 0xddc   :  { %1787 = vadd.xlane.f32.xlu2 %v1786_v32  ;;  %v2036_v32 = vld [vmem:[%s3456_s21] sm:$0xff] }
 0xddd   :  { %1679 = vrot.lane.b32.xlu1 %v3280_v30, %s2763_s2 }
 0xdf4   :  { %1791 = vrot.lane.b32.xlu2 %v3280_v30, %s2769_s20 }
 0xe07   :  { %1942 = vadd.xlane.f32.xlu1 %v1941_v15 }
 0xe37   :  { %v1872_v37 = vpop.xlane.xlu1 %1871 }
 0xe38   :  { %v1873_v39 = vsub.f32 %v1869_v22, %v1872_v37 }
 0xe3a   :  { %v1874_v8 = vmul.f32 1.442695, %v1873_v39 }
 0xe3c   :  { %2351 = vpow2.f32 %v1874_v8 }
 0xe42   :  { %v2352_v40 = vpop.eup %2351 }
 0xe43   :  { %v1876_v41 = vsel %vm338_vm1, %v2352_v40, 0.0 }
 0xe44   :  { %1877 = vadd.xlane.f32.xlu0 %v1876_v41 }
 0xe47   :  { %v1676_v42 = vpop.xlane.xlu0 %1675 }
 0xe48   :  { %2353 = vrcp.f32 %v1676_v42 }
 0xe4e   :  { %v2354_v38 = vpop.eup %2353 }
 0xe4f   :  { %v1678_v44 = vmul.f32 %v2354_v38, %v2348_v31  ;;  %v1680_v45 = vpop.permute.xlu1 %1679  ;;  %v1788_v46 = vpop.xlane.xlu2 %1787  ;;  %v2039_v31 = vld [vmem:[%s3456_s21 + $0x18] sm:$0xff] }
 0xe50   :  { %2355 = vrcp.f32 %v1788_v46  ;;  %1700 = vmatpush.msra.mxu1 %v1680_v45  ;;  %2067 = vmatpush.msra.mxu0 %v2039_v31  ;;  %v3404_v45 = vld [vmem:[#allocation20] ss:$0 sm:$0xff] }
 0xe51   :  { %2225 = vmatmul.msk.f32.vlgmr.msra.gmra.mxu1 %vm338_vm1, %v1678_v44 }
 0xe52   :  { %2068 = vmatpush.msra.mxu0 %v2038_v28 }
 0xe56   :  { %v2356_v59 = vpop.eup %2355 }
 0xe57   :  { %v1790_v48 = vmul.f32 %v2356_v59, %v2350_v63  ;;  %v1792_v49 = vpop.permute.xlu2 %1791  ;;  %v2037_v63 = vld [vmem:[%s3456_s21 + $0x8] sm:$0xff]  ;;  %s2774_s21 = smov [#allocation25]  }
 0xe58   :  { %1881 = vrot.lane.b32.xlu0 %v3280_v30, %s2765_s18  ;;  %1812 = vmatpush.msrb.mxu1 %v1792_v49  ;;  %s2144_s11 = sshll.u32 %s2774_s21, 4  ;;  %s2145_s11 = int_to_ptr.vmem [resolvable:$true] %s2144_s11 }
 0xe59   :  { %2230 = vmatmul.msk.f32.vlgmr.msrb.gmra.mxu1 %vm338_vm1, %v1790_v48  ;;  %2069 = vmatpush.msra.mxu0 %v2037_v63 }
 0xe5a   :  { %1925 = vmatpush.msra.mxu1 %v3322_v4 }
 0xe5b   :  { %2070 = vmatpush.msra.mxu0 %v2036_v32 }
 0xe7a   :  { %v1943_v50 = vpop.xlane.xlu1 %1942 }
 0xe7b   :  { %v1947_v51 = vmul.f32 %v1943_v50, %v3146_v16 }
 0xe7d   :  { %v1949_v53 = vsub.f32 %v1939_v36, %v1947_v51 }
 0xe7f   :  { %v1951_v2 = vmul.f32 %v1949_v53, %v1949_v53 }
 0xe81   :  { %v1953_v55 = vsel %vm299_vm0, %v1951_v2, 0.0 }
 0xe82   :  { %1954 = vadd.xlane.f32.xlu0 %v1953_v55 }
 0xeb7   :  { %v1878_v56 = vpop.xlane.xlu0 %1877 }
 0xeb8   :  { %2357 = vrcp.f32 %v1878_v56 }
 0xebe   :  { %v2358_v58 = vpop.eup %2357 }
 0xebf   :  { %v1880_v60 = vmul.f32 %v2358_v58, %v2352_v40 }
 0xeca   :  { %v1882_v61 = vpop.permute.xlu0 %1881 }
 0xecb   :  { %1902 = vmatpush.msra.mxu2 %v1882_v61 }
 0xecc   :  { %2234 = vmatmul.msk.f32.vlgmr.msra.gmra.mxu2 %vm338_vm1, %v1880_v60 }
 0xece   :  { %v1702_v30 = vpop.f32.mrf.mxu1 }
 0xecf   :  { %2226 = vmatmul.msk.f32.vlgmr.msra.gmra.mxu3 %vm338_vm1, %v1702_v30 }
 0xed0   :  { %2023 = vmatpush.msra.mxu3 %v2000_v0 }
 0xed2   :  { %2024 = vmatpush.msra.mxu3 %v1999_v1 }
 0xed4   :  { %2025 = vmatpush.msra.mxu3 %v1998_v3 }
 0xed6   :  { %v1814_v62 = vpop.f32.mrf.mxu1  ;;  %2026 = vmatpush.msra.mxu3 %v1997_v6 }
 0xed7   :  { %2231 = vmatmul.msk.f32.vlgmr.msrb.gmra.mxu3 %vm338_vm1, %v1814_v62 }
 0xef5   :  { %v1955_v7 = vpop.xlane.xlu0 %1954 }
 0xef6   :  { %v1959_v9 = vmul.f32 %v1955_v7, %v3146_v16 }
 0xef8   :  { %v1961_v4 = vadd.f32 1e-05, %v1959_v9 }
 0xefa   :  { %2359 = vrsqrt.f32 %v1961_v4  ;;  %vm1969_vm14 = vweird.f32 %v1961_v4 }
 0xf00   :  { %v2360_v5 = vpop.eup %2359 }
 0xf01   :  { %v1964_v11 = vmul.f32 %v2360_v5, %v1961_v4  ;;  %vm1970_vm13 = vweird.f32 %v2360_v5 }
 0xf02   :  { %vm1971_vm15 = vmor %vm1969_vm14, %vm1970_vm13 }
 0xf03   :  { %v1965_v12 = vmul.f32 %v2360_v5, %v1964_v11 }
 0xf05   :  { %v1966_v13 = vmul.f32 0.5, %v1965_v12 }
 0xf07   :  { %v1967_v14 = vsub.f32 1.5, %v1966_v13 }
 0xf09   :  { %v1968_v17 = vmul.f32 %v2360_v5, %v1967_v14 }
 0xf0b   :  { %v1972_v19 = vsel %vm1971_vm15, %v2360_v5, %v1968_v17 }
 0xf0c   :  { %v1983_v21 = vmul.f32 %v1972_v19, %v1949_v53 }
 0xf0e   :  { %v1988_v22 = vmul.f32 %v3363_v18, %v1983_v21 }
 0xf10   :  { %v1993_v23 = vadd.f32 %v3365_v20, %v1988_v22 }
 0xf12   :  { %v1995_v24 = vmul.f32 %v1993_v23, %v3173_v43 }
 0xf14   :  { %2236 = vmatmul.msk.f32.vlgmr.msra.gmra.mxu3 %vm299_vm0, %v1995_v24 }
 0xf4f   :  { %v1904_v57 = vpop.f32.mrf.mxu2 }
 0xf50   :  { %2235 = vmatmul.msk.f32.vlgmr.msra.gmra.mxu1 %vm338_vm1, %v1904_v57  ;;  %vm2048_vm1 = vcmask 523264  }
 0xf52   :  { %v1725_v33 = vpop.f32.mrf.mxu3 }
 0xf53   :  { %v1749_v39 = vadd.f32 %v3334_v10, %v1725_v33 }
 0xf5a   :  { %v1837_v47 = vpop.f32.mrf.mxu3 }
 0xf5b   :  { %v1840_v8 = vadd.f32 %v1837_v47, %v1749_v39 }
 0xf97   :  { %v2028_v36 = vpop.f32.mrf.mxu3 }
 0xf98   :  { %v2029_v15 = vadd.f32 %v3396_v35, %v2028_v36 }
 0xf9a   :  { %v2034_v37 = vmax.f32 %v2029_v15, 0.0 }
 0xf9c   :  { %2238 = vmatmul.msk.f32.vlgmr.msra.gmra.mxu0 %vm2048_vm1, %v2034_v37 }
 0xfcd   :  { %v1927_v40 = vpop.f32.mrf.mxu1 }
 0xfce   :  { %v1930_v41 = vadd.f32 %v1927_v40, %v1840_v8 }
 0xfd0   :  { %v1936_v42 = vadd.f32 %v3346_v34, %v1930_v41 }
 0xfd2   :  { %v1940_v38 = vadd.f32 %v1936_v42, %v3275_v27 }
 0xfd4   :  { %v1944_v44 = vsel %vm299_vm0, %v1940_v38, 0.0 }
 0xfd5   :  { %1945 = vadd.xlane.f32.xlu2 %v1944_v44 }
0x1019   :  { %v2072_v46 = vpop.f32.mrf.mxu0 }
0x101a   :  { %v2073_v59 = vadd.f32 %v3404_v45, %v2072_v46 }
0x101c   :  { %v2080_v48 = vadd.f32 %v2073_v59, %v1995_v24 }
0x101e   :  { %v2082_v49 = vsel %vm299_vm0, %v2080_v48, 0.0 }
0x101f   :  { %2083 = vadd.xlane.f32.xlu2 %v2082_v49 }
0x1048   :  { %v1946_v10 = vpop.xlane.xlu2 %1945 }
0x1049   :  { %v1948_v50 = vmul.f32 %v1946_v10, %v3146_v16 }
0x104b   :  { %v1950_v51 = vsub.f32 %v1940_v38, %v1948_v50 }
0x104d   :  { %v1952_v53 = vmul.f32 %v1950_v51, %v1950_v51 }
0x104f   :  { %v1956_v34 = vsel %vm299_vm0, %v1952_v53, 0.0 }
0x1050   :  { %1957 = vadd.xlane.f32.xlu1 %v1956_v34 }
0x1092   :  { %v2084_v27 = vpop.xlane.xlu2 %2083 }
0x1093   :  { %v2088_v2 = vmul.f32 %v2084_v27, %v3146_v16 }
0x1095   :  { %v2090_v55 = vsub.f32 %v2080_v48, %v2088_v2 }
0x1097   :  { %v2092_v56 = vmul.f32 %v2090_v55, %v2090_v55 }
0x1099   :  { %v2094_v58 = vsel %vm299_vm0, %v2092_v56, 0.0 }
0x109a   :  { %2095 = vadd.xlane.f32.xlu1 %v2094_v58 }
0x10c3   :  { %v1958_v60 = vpop.xlane.xlu1 %1957 }
0x10c4   :  { %v1960_v61 = vmul.f32 %v1958_v60, %v3146_v16 }
0x10c6   :  { %v1962_v30 = vadd.f32 1e-05, %v1960_v61 }
0x10c8   :  { %2361 = vrsqrt.f32 %v1962_v30  ;;  %vm1979_vm3 = vweird.f32 %v1962_v30 }
0x10ce   :  { %v2362_v62 = vpop.eup %2361 }
0x10cf   :  { %v1974_v0 = vmul.f32 %v2362_v62, %v1962_v30  ;;  %vm1980_vm2 = vweird.f32 %v2362_v62 }
0x10d0   :  { %vm1981_vm4 = vmor %vm1979_vm3, %vm1980_vm2 }
0x10d1   :  { %v1975_v1 = vmul.f32 %v2362_v62, %v1974_v0 }
0x10d3   :  { %v1976_v3 = vmul.f32 0.5, %v1975_v1 }
0x10d5   :  { %v1977_v6 = vsub.f32 1.5, %v1976_v3 }
0x10d7   :  { %v1978_v7 = vmul.f32 %v2362_v62, %v1977_v6 }
0x10d9   :  { %v1982_v9 = vsel %vm1981_vm4, %v2362_v62, %v1978_v7 }
0x10da   :  { %v1984_v4 = vmul.f32 %v1982_v9, %v1950_v51 }
0x10dc   :  { %v1989_v5 = vmul.f32 %v3363_v18, %v1984_v4  ;;  %v2287_v18 = vld [vmem:[#allocation22] ss:$0 sm:$0xff] }
0x10de   :  { %v1994_v11 = vadd.f32 %v3365_v20, %v1989_v5 }
0x10e0   :  { %v1996_v12 = vmul.f32 %v1994_v11, %v3271_v26 }
0x10e2   :  { %2237 = vmatmul.msk.f32.gmra.mxu3 %vm299_vm0, %v1996_v12 }
0x110d   :  { %v2096_v13 = vpop.xlane.xlu1 %2095 }
0x110e   :  { %v2100_v14 = vmul.f32 %v2096_v13, %v3146_v16 }
0x1110   :  { %v2102_v17 = vadd.f32 1e-05, %v2100_v14 }
0x1112   :  { %2363 = vrsqrt.f32 %v2102_v17  ;;  %vm2110_vm6 = vweird.f32 %v2102_v17 }
0x1118   :  { %v2364_v19 = vpop.eup %2363 }
0x1119   :  { %v2105_v21 = vmul.f32 %v2364_v19, %v2102_v17  ;;  %vm2111_vm5 = vweird.f32 %v2364_v19 }
0x111a   :  { %vm2112_vm7 = vmor %vm2110_vm6, %vm2111_vm5 }
0x111b   :  { %v2106_v22 = vmul.f32 %v2364_v19, %v2105_v21 }
0x111d   :  { %v2107_v23 = vmul.f32 0.5, %v2106_v22 }
0x111f   :  { %v2108_v24 = vsub.f32 1.5, %v2107_v23 }
0x1121   :  { %v2109_v25 = vmul.f32 %v2364_v19, %v2108_v24 }
0x1123   :  { %v2113_v20 = vsel %vm2112_vm7, %v2364_v19, %v2109_v25 }
0x1124   :  { %v2124_v29 = vmul.f32 %v2113_v20, %v2090_v55 }
0x1126   :  { %v2129_v54 = vmul.f32 %v2287_v18, %v2124_v29 }
0x1128   :  { %v2134_v31 = vadd.f32 %v2288_v52, %v2129_v54 }
0x112a   :  { %v2136_v57 = vmul.f32 %v2134_v31, %v3173_v43 }
0x112c   :  { %2138 = vst.msk [vmem:[#allocation25] sm:$0xff] %vm299_vm0, %v2136_v57 }
0x1165   :  { %v2031_v28 = vpop.f32.mrf.mxu3 }
0x1166   :  { %v2032_v63 = vadd.f32 %v3396_v35, %v2031_v28 }
0x1168   :  { %v2035_v32 = vmax.f32 %v2032_v63, 0.0 }
0x116a   :  { %2239 = vmatmul.msk.f32.gmra.mxu0 %vm2048_vm1, %v2035_v32 }
0x11e7   :  { %v2075_v33 = vpop.f32.mrf.mxu0 }
0x11e8   :  { %v2076_v47 = vadd.f32 %v3404_v45, %v2075_v33 }
0x11ea   :  { %v2081_v36 = vadd.f32 %v2076_v47, %v1996_v12 }
0x11ec   :  { %v2085_v15 = vsel %vm299_vm0, %v2081_v36, 0.0 }
0x11ed   :  { %2086 = vadd.xlane.f32.xlu0 %v2085_v15 }
0x1260   :  { %v2087_v37 = vpop.xlane.xlu0 %2086 }
0x1261   :  { %v2089_v39 = vmul.f32 %v2087_v37, %v3146_v16 }
0x1263   :  { %v2091_v8 = vsub.f32 %v2081_v36, %v2089_v39 }
0x1265   :  { %v2093_v43 = vmul.f32 %v2091_v8, %v2091_v8 }
0x1267   :  { %v2097_v40 = vsel %vm299_vm0, %v2093_v43, 0.0 }
0x1268   :  { %2098 = vadd.xlane.f32.xlu2 %v2097_v40 }
0x12db   :  { %v2099_v41 = vpop.xlane.xlu2 %2098 }
0x12dc   :  { %v2101_v35 = vmul.f32 %v2099_v41, %v3146_v16 }
0x12de   :  { %v2103_v42 = vadd.f32 1e-05, %v2101_v35 }
0x12e0   :  { %2365 = vrsqrt.f32 %v2103_v42  ;;  %vm2120_vm9 = vweird.f32 %v2103_v42 }
0x12e6   :  { %v2366_v38 = vpop.eup %2365 }
0x12e7   :  { %v2115_v44 = vmul.f32 %v2366_v38, %v2103_v42  ;;  %vm2121_vm8 = vweird.f32 %v2366_v38 }
0x12e8   :  { %vm2122_vm10 = vmor %vm2120_vm9, %vm2121_vm8 }
0x12e9   :  { %v2116_v45 = vmul.f32 %v2366_v38, %v2115_v44 }
0x12eb   :  { %v2117_v46 = vmul.f32 0.5, %v2116_v45 }
0x12ed   :  { %v2118_v59 = vsub.f32 1.5, %v2117_v46 }
0x12ef   :  { %v2119_v48 = vmul.f32 %v2366_v38, %v2118_v59 }
0x12f1   :  { %v2123_v49 = vsel %vm2122_vm10, %v2366_v38, %v2119_v48 }
0x12f2   :  { %v2125_v10 = vmul.f32 %v2123_v49, %v2091_v8 }
0x12f4   :  { %v2130_v50 = vmul.f32 %v2287_v18, %v2125_v10 }
0x12f6   :  { %v2135_v16 = vadd.f32 %v2288_v52, %v2130_v50 }
0x12f8   :  { %v2137_v51 = vmul.f32 %v2135_v16, %v3271_v26 }
0x12fa   :  { %2139 = vst.msk [vmem:[#allocation25 + $0x8] sm:$0xff] %vm299_vm0, %v2137_v51 }
0x12fb   :  { %2152 = dma.vmem_to_hbm [thread:$0]  %s2145_s11, 256, %s2147_s27, [#allocation4], %s2746_s4, %s2746_s4, %s2747_s28  }
0x12fc   :  { %2743 = dma.done.wait [#allocation4], 256  }
0x12fd   :  { %2744 = vsyncadd [#allocation4], 4294967040 }
0x12fe   :  { %2157 = vsyncpa [#allocation3], 1 }
0x12ff   :  { %2158 = vsyncpa [#allocation6], 1 }
0x1300   :  { %2159 = vsyncpa [#allocation9], 1 }
0x1301   :  { %2160 = vsyncpa [#allocation12], 1 }
0x1302   :  { %2161 = vsyncpa [#allocation15], 1 }
0x1303   :  { %2162 = vsyncpa [#allocation18], 1 }
0x1304   :  { %2163 = vsyncpa [#allocation21], 1 }
0x1305   :  { %2164 = vsyncpa [#allocation24], 1 }
0x1306   :  { %2165 = vsyncpa [#allocation4], 1 }

</bundles_post_ra>
